<compile_context>
chip_gen: v7x
topology: tpu7x:2x2x1
jax: 0.10.0
libtpu: 0.0.40
codegen_flags: <defaults>
</compile_context>

<pallas_src>
import functools

import jax
import jax.numpy as jnp
from jax.experimental import pallas as pl
from jax.experimental.pallas import tpu as pltpu


def _round_up(n, m):
    return ((n + m - 1) // m) * m


def _device_kind():
    try:
        return jax.devices()[0].device_kind.lower()
    except Exception:
        return ""


def _vmem_limit_bytes():
    """~3/4 of physical VMEM; fallback keys off the device kind."""
    try:
        cap = getattr(pltpu.get_tpu_info(), "vmem_capacity_bytes", None)
        if cap:
            return int(cap) * 3 // 4
    except Exception:
        pass
    if "v7" in _device_kind():
        return 48 * 1024 * 1024      # 64 MiB physical on v7x
    return 96 * 1024 * 1024          # 128 MiB physical on v5e / v6e


# --------------------------------------------------------------------------
# Kernel 1: fused phi|g 1x1 conv + 2x2 maxpool over a key chunk.
# phi is written pre-transposed (ICp, TK) so the attention score matmul is a
# plain (M,K)@(K,N) dot with no per-tile transpose.
# --------------------------------------------------------------------------
def _proj_pool_kernel(xk_ref, wpg_ref, bpg_ref, phit_ref, g_ref, *, Cp, ICp, TK):
    xk = xk_ref[0].reshape(4 * TK, Cp)                       # bf16 (4*TK, Cp)
    proj = jnp.dot(xk, wpg_ref[...],
                   preferred_element_type=jnp.float32)       # (4*TK, 2*ICp) f32
    pooled = jnp.maximum(
        jnp.maximum(proj[0 * TK:1 * TK], proj[1 * TK:2 * TK]),
        jnp.maximum(proj[2 * TK:3 * TK], proj[3 * TK:4 * TK]))
    pooled = pooled + bpg_ref[...]            # bias after max == conv + pool
    phit_ref[0] = jnp.transpose(pooled[:, :ICp]).astype(jnp.bfloat16)  # (ICp, TK)
    g_ref[0] = pooled[:, ICp:].astype(jnp.bfloat16)                    # (TK, ICp)


# --------------------------------------------------------------------------
# Kernel 2: per-query-tile attention (theta, softmax, y, W conv, BN, residual).
# Carry-free grid (B, n_q): both axes are "parallel".
# --------------------------------------------------------------------------
def _attn_kernel(xq_ref, phit_ref, g_ref, wt_ref, bt_ref, ww_ref, bw_ref,
                 bns_ref, bnb_ref, o_ref, *, Cp, ICp, TQK):
    xq = xq_ref[0].reshape(4 * TQK, Cp)                      # bf16 (4*TQK, Cp)

    theta = jnp.dot(xq, wt_ref[...],
                    preferred_element_type=jnp.float32) + bt_ref[...]   # (4TQK, ICp)

    # scores: theta @ phi^T  (phi stored pre-transposed once per key chunk)
    f = jnp.dot(theta.astype(jnp.bfloat16), phit_ref[0],
                preferred_element_type=jnp.float32)                     # (4TQK, Nk)
    m = jnp.max(f, axis=-1, keepdims=True)
    e = jnp.exp((f - m).astype(jnp.bfloat16))        # bf16 EUP (v6e/v7x); <=1.0
    denom = jnp.sum(e.astype(jnp.float32), axis=-1, keepdims=True)      # f32 accum

    # Deferred softmax normalisation on the small (., ICp) result.
    y = jnp.dot(e, g_ref[0], preferred_element_type=jnp.float32)        # (4TQK, ICp)
    y = y * pl.reciprocal(denom, approx=True)

    wy = jnp.dot(y.astype(jnp.bfloat16), ww_ref[...],
                 preferred_element_type=jnp.float32) + bw_ref[...]      # (4TQK, Cp)
    wy = wy * bns_ref[...] + bnb_ref[...]                               # eval-mode BN
    z = wy + xq.astype(jnp.float32)                                     # residual
    o_ref[0] = z.reshape(4, TQK, Cp)


def nonlocal_block_2d(x_nchw, params, *, block_q_windows=None):
    """x_nchw: (B, C, H, W) float32.  Returns (B, C, H, W) float32."""
    B, C, H, W = x_nchw.shape
    assert H % 2 == 0 and W % 2 == 0, "sub_sample=True needs even H, W"
    IC = params["w_theta"].shape[1]
    Hk, Wk = H // 2, W // 2
    Nk = Hk * Wk
    assert Nk % 8 == 0, "pooled spatial size must be a multiple of 8"

    # Lane padding (no-op for realistic non-local widths where C, IC >= 128).
    Cp = _round_up(C, 128)
    ICp = _round_up(IC, 128)

    # Query tile (pooling windows per step): multiple of 8 that divides Nk.
    if block_q_windows is None:
        block_q_windows = 64 if "v7" in _device_kind() else 128
    tqk = max(8, min(block_q_windows, Nk))
    tqk -= tqk % 8
    while Nk % tqk:
        tqk -= 8          # always terminates at 8 since Nk % 8 == 0
    n_q = Nk // tqk

    # Key-projection chunk: it becomes the last dim of transposed phi, so it
    # must be a multiple of 128 (or the full Nk).
    tk = Nk
    for cand in (512, 256, 128):
        if Nk % cand == 0:
            tk = cand
            break
    n_k = Nk // tk

    # ---- pack x once: NCHW -> position-major window-grouped bf16 (B,4,Nk,Cp)
    x_nhwc = jnp.transpose(x_nchw, (0, 2, 3, 1))
    if Cp != C:
        x_nhwc = jnp.pad(x_nhwc, ((0, 0), (0, 0), (0, 0), (0, Cp - C)))
    xw = (x_nhwc.reshape(B, Hk, 2, Wk, 2, Cp)
          .transpose(0, 2, 4, 1, 3, 5)          # (B, dr, dc, Hk, Wk, Cp)
          .reshape(B, 4, Nk, Cp)
          .astype(jnp.bfloat16))

    # ---- pad / fuse parameters (matmul weights cast to bf16).
    def pad2(a, r, c):
        return jnp.pad(a, ((0, r - a.shape[0]), (0, c - a.shape[1])))

    w_t = pad2(params["w_theta"], Cp, ICp).astype(jnp.bfloat16)
    b_t = pad2(params["b_theta"], 1, ICp)
    w_pg = jnp.concatenate([pad2(params["w_phi"], Cp, ICp),
                            pad2(params["w_g"], Cp, ICp)],
                           axis=1).astype(jnp.bfloat16)
    b_pg = jnp.concatenate([pad2(params["b_phi"], 1, ICp),
                            pad2(params["b_g"], 1, ICp)], axis=1)
    w_W = pad2(params["w_W"], ICp, Cp).astype(jnp.bfloat16)
    b_W = pad2(params["b_W"], 1, Cp)
    bn_s = pad2(params["bn_scale"], 1, Cp)
    bn_b = pad2(params["bn_shift"], 1, Cp)

    vmem_limit = _vmem_limit_bytes()

    # ---- kernel 1: pooled phi (transposed) and g, streamed over key chunks.
    proj_kernel = functools.partial(_proj_pool_kernel, Cp=Cp, ICp=ICp, TK=tk)
    phi_t, g_p = pl.pallas_call(
        proj_kernel,
        out_shape=(jax.ShapeDtypeStruct((B, ICp, Nk), jnp.bfloat16),
                   jax.ShapeDtypeStruct((B, Nk, ICp), jnp.bfloat16)),
        grid_spec=pltpu.PrefetchScalarGridSpec(
            num_scalar_prefetch=0,
            grid=(B, n_k),
            in_specs=[
                pl.BlockSpec((1, 4, tk, Cp), lambda b, k: (b, 0, k, 0)),
                pl.BlockSpec((Cp, 2 * ICp), lambda b, k: (0, 0)),
                pl.BlockSpec((1, 2 * ICp), lambda b, k: (0, 0)),
            ],
            out_specs=(pl.BlockSpec((1, ICp, tk), lambda b, k: (b, 0, k)),
                       pl.BlockSpec((1, tk, ICp), lambda b, k: (b, k, 0))),
        ),
        compiler_params=pltpu.CompilerParams(
            dimension_semantics=("parallel", "parallel"),
            vmem_limit_bytes=vmem_limit,
        ),
    )(xw, w_pg, b_pg)

    # ---- kernel 2: attention over query tiles (no carried scratch).
    attn_kernel = functools.partial(_attn_kernel, Cp=Cp, ICp=ICp, TQK=tqk)

    def const(shape):
        return pl.BlockSpec(shape, lambda b, q: (0,) * len(shape))

    out = pl.pallas_call(
        attn_kernel,
        out_shape=jax.ShapeDtypeStruct((B, 4, Nk, Cp), jnp.float32),
        grid_spec=pltpu.PrefetchScalarGridSpec(
            num_scalar_prefetch=0,
            grid=(B, n_q),
            in_specs=[
                pl.BlockSpec((1, 4, tqk, Cp), lambda b, q: (b, 0, q, 0)),
                pl.BlockSpec((1, ICp, Nk), lambda b, q: (b, 0, 0)),   # phi^T
                pl.BlockSpec((1, Nk, ICp), lambda b, q: (b, 0, 0)),   # g
                const((Cp, ICp)), const((1, ICp)),                    # theta
                const((ICp, Cp)), const((1, Cp)),                     # W conv
                const((1, Cp)), const((1, Cp)),                       # BN s / b
            ],
            out_specs=pl.BlockSpec((1, 4, tqk, Cp), lambda b, q: (b, 0, q, 0)),
        ),
        compiler_params=pltpu.CompilerParams(
            dimension_semantics=("parallel", "parallel"),
            vmem_limit_bytes=vmem_limit,
        ),
    )(xw, phi_t, g_p, w_t, b_t, w_W, b_W, bn_s, bn_b)

    # ---- unpack: (B, 4, Nk, Cp) -> NHWC -> NCHW, drop channel padding.
    z = (out.reshape(B, 2, 2, Hk, Wk, Cp)
         .transpose(0, 3, 1, 4, 2, 5)
         .reshape(B, H, W, Cp)[..., :C]
         .transpose(0, 3, 1, 2))
    return z


def init_params(key, C, IC):
    ks = jax.random.split(key, 10)

    def w(k, shape):
        return jax.random.normal(k, shape, jnp.float32) * 0.05

    gamma = jax.random.uniform(ks[8], (C,), jnp.float32, 0.5, 1.5)
    beta = w(ks[9], (C,))
    eps = 1e-5
    # eval-mode BatchNorm with default running stats (mean=0, var=1)
    scale = gamma / jnp.sqrt(1.0 + eps)
    shift = beta
    return dict(
        w_theta=w(ks[0], (C, IC)), b_theta=w(ks[1], (1, IC)),
        w_phi=w(ks[2], (C, IC)), b_phi=w(ks[3], (1, IC)),
        w_g=w(ks[4], (C, IC)), b_g=w(ks[5], (1, IC)),
        w_W=w(ks[6], (IC, C)), b_W=w(ks[7], (1, C)),
        bn_scale=scale.reshape(1, C), bn_shift=shift.reshape(1, C),
    )


def reference(x_nchw, params):
    """Pure-JAX reference of _NonLocalBlockND.forward (dim=2, sub_sample, bn)."""
    B, C, H, W = x_nchw.shape
    IC = params["w_theta"].shape[1]
    xf = x_nchw.transpose(0, 2, 3, 1).reshape(B, H * W, C)
    theta = xf @ params["w_theta"] + params["b_theta"]
    phi = xf @ params["w_phi"] + params["b_phi"]
    g = xf @ params["w_g"] + params["b_g"]

    def pool(t):  # maxpool 2x2 on (B, H*W, IC) spatial-flattened tensor
        t6 = t.reshape(B, H // 2, 2, W // 2, 2, IC)
        return t6.max(axis=(2, 4)).reshape(B, (H // 2) * (W // 2), IC)

    phi_p = pool(phi)
    g_p = pool(g)
    f = jnp.einsum("bnd,bmd->bnm", theta, phi_p)
    f = jax.nn.softmax(f, axis=-1)
    y = jnp.einsum("bnm,bmd->bnd", f, g_p)
    wy = y @ params["w_W"] + params["b_W"]
    wy = wy * params["bn_scale"] + params["bn_shift"]
    z = wy + xf
    return z.reshape(B, H, W, C).transpose(0, 3, 1, 2)


if __name__ == "__main__":
    key = jax.random.PRNGKey(0)
    kx, kp = jax.random.split(key)

    B, C, H, W = 2, 8, 16, 16          # small NCHW input, in_channels=8
    IC = C // 2                        # inter_channels = in_channels // 2

    x = jax.random.normal(kx, (B, C, H, W), jnp.float32)
    params = init_params(kp, C, IC)

    # block_q_windows=32 -> 2 query tiles per batch: exercises the multi-tile
    # output path and the per-batch pooled phi/g reuse across query tiles.
    fwd = jax.jit(functools.partial(nonlocal_block_2d, block_q_windows=32))
    z = jax.block_until_ready(fwd(x, params))

    z_ref = reference(x, params)
    assert z.shape == x.shape
    err = float(jnp.max(jnp.abs(z - z_ref)))
    # bf16 x / bf16 MXU operands / bf16 exp + approx reciprocal => loose tol.
    assert err < 3e-2, f"max abs error {err}"
    print("KERNEL_OK")
</pallas_src>

<mosaic_0001>
module attributes {stable_mosaic.version = 11 : i64} {
  func.func @_proj_pool_kernel(%arg0: i32, %arg1: i32, %arg2: memref<1x4x64x128xbf16, #tpu.memory_space<vmem>>, %arg3: memref<128x256xbf16, #tpu.memory_space<vmem>>, %arg4: memref<1x256xf32, #tpu.memory_space<vmem>>, %arg5: memref<1x128x64xbf16, #tpu.memory_space<vmem>>, %arg6: memref<1x64x128xbf16, #tpu.memory_space<vmem>>) attributes {dimension_semantics = [#tpu.dimension_semantics<parallel>, #tpu.dimension_semantics<parallel>], iteration_bounds = array<i64: 2, 1>, scalar_prefetch = 0 : i64, scratch_operands = 0 : i64, tpu.core_type = #tpu.core_type<tc>, window_params = [{transform_indices = @transform_0, window_bounds = array<i64: 1, 4, 64, 128>}, {pipeline_mode = #tpu.pipeline_mode<synchronous>, transform_indices = @transform_1, window_bounds = array<i64: 128, 256>}, {pipeline_mode = #tpu.pipeline_mode<synchronous>, transform_indices = @transform_2, window_bounds = array<i64: 1, 256>}, {transform_indices = @transform_3, window_bounds = array<i64: 1, 128, 64>}, {transform_indices = @transform_4, window_bounds = array<i64: 1, 64, 128>}]} {
    %c0 = arith.constant 0 : index
    %c0_0 = arith.constant 0 : index
    %c0_1 = arith.constant 0 : index
    %c0_2 = arith.constant 0 : index
    %0 = vector.load %arg2[%c0, %c0_0, %c0_1, %c0_2] : memref<1x4x64x128xbf16, #tpu.memory_space<vmem>>, vector<1x4x64x128xbf16>
    %1 = vector.shape_cast %0 : vector<1x4x64x128xbf16> to vector<4x64x128xbf16>
    %2 = vector.shape_cast %1 : vector<4x64x128xbf16> to vector<256x128xbf16>
    %c0_3 = arith.constant 0 : index
    %c0_4 = arith.constant 0 : index
    %3 = vector.load %arg3[%c0_3, %c0_4] : memref<128x256xbf16, #tpu.memory_space<vmem>>, vector<128x256xbf16>
    %cst = arith.constant dense<0.000000e+00> : vector<256x256xf32>
    %4 = tpu.matmul %2, %3, %cst {dimension_numbers = #tpu.dot_dimension_numbers<[1], [0], [0], [1], [0, 0, 1, 1], [], []>} : vector<256x128xbf16>, vector<128x256xbf16>, vector<256x256xf32> -> vector<256x256xf32>
    %5 = vector.extract_strided_slice %4 {offsets = [0, 0], sizes = [64, 256], strides = [1, 1]} : vector<256x256xf32> to vector<64x256xf32>
    %6 = vector.extract_strided_slice %4 {offsets = [64, 0], sizes = [64, 256], strides = [1, 1]} : vector<256x256xf32> to vector<64x256xf32>
    %7 = arith.maximumf %5, %6 : vector<64x256xf32>
    %8 = vector.extract_strided_slice %4 {offsets = [128, 0], sizes = [64, 256], strides = [1, 1]} : vector<256x256xf32> to vector<64x256xf32>
    %9 = vector.extract_strided_slice %4 {offsets = [192, 0], sizes = [64, 256], strides = [1, 1]} : vector<256x256xf32> to vector<64x256xf32>
    %10 = arith.maximumf %8, %9 : vector<64x256xf32>
    %11 = arith.maximumf %7, %10 : vector<64x256xf32>
    %c0_5 = arith.constant 0 : index
    %c0_6 = arith.constant 0 : index
    %12 = vector.load %arg4[%c0_5, %c0_6] : memref<1x256xf32, #tpu.memory_space<vmem>>, vector<1x256xf32>
    %13 = vector.broadcast %12 : vector<1x256xf32> to vector<64x256xf32>
    %14 = arith.addf %11, %13 : vector<64x256xf32>
    %15 = vector.extract_strided_slice %14 {offsets = [0, 0], sizes = [64, 128], strides = [1, 1]} : vector<64x256xf32> to vector<64x128xf32>
    %16 = tpu.transpose %15, [1, 0] : vector<64x128xf32> -> vector<128x64xf32>
    %17 = arith.truncf %16 : vector<128x64xf32> to vector<128x64xbf16>
    %c0_7 = arith.constant 0 : index
    %c0_8 = arith.constant 0 : index
    %c0_9 = arith.constant 0 : index
    %18 = vector.load %arg5[%c0_7, %c0_8, %c0_9] : memref<1x128x64xbf16, #tpu.memory_space<vmem>>, vector<1x128x64xbf16>
    %19 = vector.shape_cast %18 : vector<1x128x64xbf16> to vector<128x64xbf16>
    %20 = vector.shape_cast %17 : vector<128x64xbf16> to vector<1x128x64xbf16>
    tpu.vector_store %arg5[%c0_7, %c0_8, %c0_9], %20 {strides = array<i32>} : memref<1x128x64xbf16, #tpu.memory_space<vmem>>, vector<1x128x64xbf16>,
    %21 = vector.extract_strided_slice %14 {offsets = [0, 128], sizes = [64, 128], strides = [1, 1]} : vector<64x256xf32> to vector<64x128xf32>
    %22 = arith.truncf %21 : vector<64x128xf32> to vector<64x128xbf16>
    %c0_10 = arith.constant 0 : index
    %c0_11 = arith.constant 0 : index
    %c0_12 = arith.constant 0 : index
    %23 = vector.load %arg6[%c0_10, %c0_11, %c0_12] : memref<1x64x128xbf16, #tpu.memory_space<vmem>>, vector<1x64x128xbf16>
    %24 = vector.shape_cast %23 : vector<1x64x128xbf16> to vector<64x128xbf16>
    %25 = vector.shape_cast %22 : vector<64x128xbf16> to vector<1x64x128xbf16>
    tpu.vector_store %arg6[%c0_10, %c0_11, %c0_12], %25 {strides = array<i32>} : memref<1x64x128xbf16, #tpu.memory_space<vmem>>, vector<1x64x128xbf16>,
    return
  }
  func.func @transform_0(%arg0: i32, %arg1: i32) -> (i32, i32, i32, i32) {
    %c0_i32 = arith.constant 0 : i32
    %c0_i32_0 = arith.constant 0 : i32
    %c0_i32_1 = arith.constant 0 : i32
    return %arg0, %c0_i32, %arg1, %c0_i32_0 : i32, i32, i32, i32
  }
  func.func @transform_1(%arg0: i32, %arg1: i32) -> (i32, i32) {
    %c0_i32 = arith.constant 0 : i32
    %c0_i32_0 = arith.constant 0 : i32
    %c0_i32_1 = arith.constant 0 : i32
    return %c0_i32, %c0_i32_0 : i32, i32
  }
  func.func @transform_2(%arg0: i32, %arg1: i32) -> (i32, i32) {
    %c0_i32 = arith.constant 0 : i32
    %c0_i32_0 = arith.constant 0 : i32
    %c0_i32_1 = arith.constant 0 : i32
    return %c0_i32, %c0_i32_0 : i32, i32
  }
  func.func @transform_3(%arg0: i32, %arg1: i32) -> (i32, i32, i32) {
    %c0_i32 = arith.constant 0 : i32
    %c0_i32_0 = arith.constant 0 : i32
    return %arg0, %c0_i32, %arg1 : i32, i32, i32
  }
  func.func @transform_4(%arg0: i32, %arg1: i32) -> (i32, i32, i32) {
    %c0_i32 = arith.constant 0 : i32
    %c0_i32_0 = arith.constant 0 : i32
    return %arg0, %arg1, %c0_i32 : i32, i32, i32
  }
}

module attributes {stable_mosaic.version = 11 : i64} {
  func.func @_attn_kernel(%arg0: i32, %arg1: i32, %arg2: memref<1x4x32x128xbf16, #tpu.memory_space<vmem>>, %arg3: memref<1x128x64xbf16, #tpu.memory_space<vmem>>, %arg4: memref<1x64x128xbf16, #tpu.memory_space<vmem>>, %arg5: memref<128x128xbf16, #tpu.memory_space<vmem>>, %arg6: memref<1x128xf32, #tpu.memory_space<vmem>>, %arg7: memref<128x128xbf16, #tpu.memory_space<vmem>>, %arg8: memref<1x128xf32, #tpu.memory_space<vmem>>, %arg9: memref<1x128xf32, #tpu.memory_space<vmem>>, %arg10: memref<1x128xf32, #tpu.memory_space<vmem>>, %arg11: memref<1x4x32x128xf32, #tpu.memory_space<vmem>>) attributes {dimension_semantics = [#tpu.dimension_semantics<parallel>, #tpu.dimension_semantics<parallel>], iteration_bounds = array<i64: 2, 2>, scalar_prefetch = 0 : i64, scratch_operands = 0 : i64, tpu.core_type = #tpu.core_type<tc>, window_params = [{transform_indices = @transform_0, window_bounds = array<i64: 1, 4, 32, 128>}, {transform_indices = @transform_1, window_bounds = array<i64: 1, 128, 64>}, {transform_indices = @transform_2, window_bounds = array<i64: 1, 64, 128>}, {pipeline_mode = #tpu.pipeline_mode<synchronous>, transform_indices = @transform_3, window_bounds = array<i64: 128, 128>}, {pipeline_mode = #tpu.pipeline_mode<synchronous>, transform_indices = @transform_4, window_bounds = array<i64: 1, 128>}, {pipeline_mode = #tpu.pipeline_mode<synchronous>, transform_indices = @transform_5, window_bounds = array<i64: 128, 128>}, {pipeline_mode = #tpu.pipeline_mode<synchronous>, transform_indices = @transform_6, window_bounds = array<i64: 1, 128>}, {pipeline_mode = #tpu.pipeline_mode<synchronous>, transform_indices = @transform_7, window_bounds = array<i64: 1, 128>}, {pipeline_mode = #tpu.pipeline_mode<synchronous>, transform_indices = @transform_8, window_bounds = array<i64: 1, 128>}, {transform_indices = @transform_9, window_bounds = array<i64: 1, 4, 32, 128>}]} {
    %c0 = arith.constant 0 : index
    %c0_0 = arith.constant 0 : index
    %c0_1 = arith.constant 0 : index
    %c0_2 = arith.constant 0 : index
    %0 = vector.load %arg2[%c0, %c0_0, %c0_1, %c0_2] : memref<1x4x32x128xbf16, #tpu.memory_space<vmem>>, vector<1x4x32x128xbf16>
    %1 = vector.shape_cast %0 : vector<1x4x32x128xbf16> to vector<4x32x128xbf16>
    %2 = vector.shape_cast %1 : vector<4x32x128xbf16> to vector<128x128xbf16>
    %c0_3 = arith.constant 0 : index
    %c0_4 = arith.constant 0 : index
    %3 = vector.load %arg5[%c0_3, %c0_4] : memref<128x128xbf16, #tpu.memory_space<vmem>>, vector<128x128xbf16>
    %cst = arith.constant dense<0.000000e+00> : vector<128x128xf32>
    %4 = tpu.matmul %2, %3, %cst {dimension_numbers = #tpu.dot_dimension_numbers<[1], [0], [0], [1], [0, 0, 1, 1], [], []>} : vector<128x128xbf16>, vector<128x128xbf16>, vector<128x128xf32> -> vector<128x128xf32>
    %c0_5 = arith.constant 0 : index
    %c0_6 = arith.constant 0 : index
    %5 = vector.load %arg6[%c0_5, %c0_6] : memref<1x128xf32, #tpu.memory_space<vmem>>, vector<1x128xf32>
    %6 = vector.broadcast %5 : vector<1x128xf32> to vector<128x128xf32>
    %7 = arith.addf %4, %6 : vector<128x128xf32>
    %8 = arith.truncf %7 : vector<128x128xf32> to vector<128x128xbf16>
    %c0_7 = arith.constant 0 : index
    %c0_8 = arith.constant 0 : index
    %c0_9 = arith.constant 0 : index
    %9 = vector.load %arg3[%c0_7, %c0_8, %c0_9] : memref<1x128x64xbf16, #tpu.memory_space<vmem>>, vector<1x128x64xbf16>
    %10 = vector.shape_cast %9 : vector<1x128x64xbf16> to vector<128x64xbf16>
    %cst_10 = arith.constant dense<0.000000e+00> : vector<128x64xf32>
    %11 = tpu.matmul %8, %10, %cst_10 {dimension_numbers = #tpu.dot_dimension_numbers<[1], [0], [0], [1], [0, 0, 1, 1], [], []>} : vector<128x128xbf16>, vector<128x64xbf16>, vector<128x64xf32> -> vector<128x64xf32>
    %cst_11 = arith.constant dense<0xFF800000> : vector<128xf32>
    %12 = vector.multi_reduction <maximumf>, %11, %cst_11 [1] : vector<128x64xf32> to vector<128xf32>
    %13 = vector.shape_cast %12 : vector<128xf32> to vector<128x1xf32>
    %14 = vector.broadcast %13 : vector<128x1xf32> to vector<128x64xf32>
    %15 = arith.subf %11, %14 : vector<128x64xf32>
    %16 = arith.truncf %15 : vector<128x64xf32> to vector<128x64xbf16>
    %17 = math.exp %16 : vector<128x64xbf16>
    %18 = arith.extf %17 : vector<128x64xbf16> to vector<128x64xf32>
    %cst_12 = arith.constant dense<0.000000e+00> : vector<128xf32>
    %19 = vector.multi_reduction <add>, %18, %cst_12 [1] : vector<128x64xf32> to vector<128xf32>
    %20 = vector.shape_cast %19 : vector<128xf32> to vector<128x1xf32>
    %c0_13 = arith.constant 0 : index
    %c0_14 = arith.constant 0 : index
    %c0_15 = arith.constant 0 : index
    %21 = vector.load %arg4[%c0_13, %c0_14, %c0_15] : memref<1x64x128xbf16, #tpu.memory_space<vmem>>, vector<1x64x128xbf16>
    %22 = vector.shape_cast %21 : vector<1x64x128xbf16> to vector<64x128xbf16>
    %cst_16 = arith.constant dense<0.000000e+00> : vector<128x128xf32>
    %23 = tpu.matmul %17, %22, %cst_16 {dimension_numbers = #tpu.dot_dimension_numbers<[1], [0], [0], [1], [0, 0, 1, 1], [], []>} : vector<128x64xbf16>, vector<64x128xbf16>, vector<128x128xf32> -> vector<128x128xf32>
    %24 = tpu.reciprocal %20 {approx = true} : vector<128x1xf32> -> vector<128x1xf32>
    %25 = vector.broadcast %24 : vector<128x1xf32> to vector<128x128xf32>
    %26 = arith.mulf %23, %25 : vector<128x128xf32>
    %27 = arith.truncf %26 : vector<128x128xf32> to vector<128x128xbf16>
    %c0_17 = arith.constant 0 : index
    %c0_18 = arith.constant 0 : index
    %28 = vector.load %arg7[%c0_17, %c0_18] : memref<128x128xbf16, #tpu.memory_space<vmem>>, vector<128x128xbf16>
    %cst_19 = arith.constant dense<0.000000e+00> : vector<128x128xf32>
    %29 = tpu.matmul %27, %28, %cst_19 {dimension_numbers = #tpu.dot_dimension_numbers<[1], [0], [0], [1], [0, 0, 1, 1], [], []>} : vector<128x128xbf16>, vector<128x128xbf16>, vector<128x128xf32> -> vector<128x128xf32>
    %c0_20 = arith.constant 0 : index
    %c0_21 = arith.constant 0 : index
    %30 = vector.load %arg8[%c0_20, %c0_21] : memref<1x128xf32, #tpu.memory_space<vmem>>, vector<1x128xf32>
    %31 = vector.broadcast %30 : vector<1x128xf32> to vector<128x128xf32>
    %32 = arith.addf %29, %31 : vector<128x128xf32>
    %c0_22 = arith.constant 0 : index
    %c0_23 = arith.constant 0 : index
    %33 = vector.load %arg9[%c0_22, %c0_23] : memref<1x128xf32, #tpu.memory_space<vmem>>, vector<1x128xf32>
    %34 = vector.broadcast %33 : vector<1x128xf32> to vector<128x128xf32>
    %35 = arith.mulf %32, %34 : vector<128x128xf32>
    %c0_24 = arith.constant 0 : index
    %c0_25 = arith.constant 0 : index
    %36 = vector.load %arg10[%c0_24, %c0_25] : memref<1x128xf32, #tpu.memory_space<vmem>>, vector<1x128xf32>
    %37 = vector.broadcast %36 : vector<1x128xf32> to vector<128x128xf32>
    %38 = arith.addf %35, %37 : vector<128x128xf32>
    %39 = arith.extf %2 : vector<128x128xbf16> to vector<128x128xf32>
    %40 = arith.addf %38, %39 : vector<128x128xf32>
    %41 = vector.shape_cast %40 : vector<128x128xf32> to vector<4x32x128xf32>
    %c0_26 = arith.constant 0 : index
    %c0_27 = arith.constant 0 : index
    %c0_28 = arith.constant 0 : index
    %c0_29 = arith.constant 0 : index
    %42 = vector.load %arg11[%c0_26, %c0_27, %c0_28, %c0_29] : memref<1x4x32x128xf32, #tpu.memory_space<vmem>>, vector<1x4x32x128xf32>
    %43 = vector.shape_cast %42 : vector<1x4x32x128xf32> to vector<4x32x128xf32>
    %44 = vector.shape_cast %41 : vector<4x32x128xf32> to vector<1x4x32x128xf32>
    tpu.vector_store %arg11[%c0_26, %c0_27, %c0_28, %c0_29], %44 {strides = array<i32>} : memref<1x4x32x128xf32, #tpu.memory_space<vmem>>, vector<1x4x32x128xf32>,
    return
  }
  func.func @transform_0(%arg0: i32, %arg1: i32) -> (i32, i32, i32, i32) {
    %c0_i32 = arith.constant 0 : i32
    %c0_i32_0 = arith.constant 0 : i32
    %c0_i32_1 = arith.constant 0 : i32
    return %arg0, %c0_i32, %arg1, %c0_i32_0 : i32, i32, i32, i32
  }
  func.func @transform_1(%arg0: i32, %arg1: i32) -> (i32, i32, i32) {
    %c0_i32 = arith.constant 0 : i32
    %c0_i32_0 = arith.constant 0 : i32
    %c0_i32_1 = arith.constant 0 : i32
    return %arg0, %c0_i32, %c0_i32_0 : i32, i32, i32
  }
  func.func @transform_2(%arg0: i32, %arg1: i32) -> (i32, i32, i32) {
    %c0_i32 = arith.constant 0 : i32
    %c0_i32_0 = arith.constant 0 : i32
    %c0_i32_1 = arith.constant 0 : i32
    return %arg0, %c0_i32, %c0_i32_0 : i32, i32, i32
  }
  func.func @transform_3(%arg0: i32, %arg1: i32) -> (i32, i32) {
    %c0_i32 = arith.constant 0 : i32
    %c0_i32_0 = arith.constant 0 : i32
    %c0_i32_1 = arith.constant 0 : i32
    return %c0_i32, %c0_i32_0 : i32, i32
  }
  func.func @transform_4(%arg0: i32, %arg1: i32) -> (i32, i32) {
    %c0_i32 = arith.constant 0 : i32
    %c0_i32_0 = arith.constant 0 : i32
    %c0_i32_1 = arith.constant 0 : i32
    return %c0_i32, %c0_i32_0 : i32, i32
  }
  func.func @transform_5(%arg0: i32, %arg1: i32) -> (i32, i32) {
    %c0_i32 = arith.constant 0 : i32
    %c0_i32_0 = arith.constant 0 : i32
    %c0_i32_1 = arith.constant 0 : i32
    return %c0_i32, %c0_i32_0 : i32, i32
  }
  func.func @transform_6(%arg0: i32, %arg1: i32) -> (i32, i32) {
    %c0_i32 = arith.constant 0 : i32
    %c0_i32_0 = arith.constant 0 : i32
    %c0_i32_1 = arith.constant 0 : i32
    return %c0_i32, %c0_i32_0 : i32, i32
  }
  func.func @transform_7(%arg0: i32, %arg1: i32) -> (i32, i32) {
    %c0_i32 = arith.constant 0 : i32
    %c0_i32_0 = arith.constant 0 : i32
    %c0_i32_1 = arith.constant 0 : i32
    return %c0_i32, %c0_i32_0 : i32, i32
  }
  func.func @transform_8(%arg0: i32, %arg1: i32) -> (i32, i32) {
    %c0_i32 = arith.constant 0 : i32
    %c0_i32_0 = arith.constant 0 : i32
    %c0_i32_1 = arith.constant 0 : i32
    return %c0_i32, %c0_i32_0 : i32, i32
  }
  func.func @transform_9(%arg0: i32, %arg1: i32) -> (i32, i32, i32, i32) {
    %c0_i32 = arith.constant 0 : i32
    %c0_i32_0 = arith.constant 0 : i32
    %c0_i32_1 = arith.constant 0 : i32
    return %arg0, %c0_i32, %arg1, %c0_i32_0 : i32, i32, i32, i32
  }
}

</mosaic_0001>

<bundles_post_ra>
// kernel: nonlocal_block_2d.2
= control target key start
LH: loop header
LB: loop body
LE: loop exit
PB: predicated region body
PF: predicated region fallthrough
CT: control target
= control target key end

     0   :  { %10 = vsyncpa [#allocation3], 0  ;;  %s2088_s0 = inlined_call_operand.hbm [shape: bf16[2,4,64,128], index: 0, kind: input, shape index: {}]   ;;  %s2089_s1 = inlined_call_operand.hbm [shape: bf16[128,256], index: 1, kind: input, shape index: {}]   ;;  %s2090_s2 = inlined_call_operand.hbm [shape: f32[1,256], index: 2, kind: input, shape index: {}]   ;;  %s2091_s3 = inlined_call_operand.hbm [shape: bf16[2,128,64], index: 3, kind: output, shape index: {0}]   ;;  %s2092_s4 = inlined_call_operand.hbm [shape: bf16[2,64,128], index: 4, kind: output, shape index: {1}]  }
   0x1   :  { %12 = vsyncpa [#allocation3 + $0x1], 0 }
   0x2   :  { %13 = vsyncpa [#allocation6], 0 }
   0x3   :  { %14 = vsyncpa [#allocation4], 0 }
   0x4   :  { %16 = vsyncpa [#allocation4 + $0x1], 0 }
   0x5   :  { %17 = vsyncpa [#allocation10], 0 }
   0x6   :  { %19 = vsyncpa [#allocation10 + $0x1], 0  ;;  %s1625_s15 = smov 0   ;;  %s1627_s16 = smov 0  }
   0x7   :  { %s1629_s17 = smov 0   ;;  %s1631_s18 = smov 0  }
   0x8   :  { %s1633_s19 = smov 0   ;;  %s1635_s20 = smov 0  }
   0x9 LB: > { %s1101_s21 = sadd.s32 4294967295, %s1586_s20   ;;  %s1102_s22 = sadd.s32 4294967294, %s1586_s20   ;;  %s1586_s20 = sphi %s1635_s20, %s25_s20   ;;  %s1582_s19 = sphi %s1633_s19, %s2114_s19   ;;  %s1578_s18 = sphi %s1631_s18, %s2113_s18   ;;  %s1574_s17 = sphi %s1629_s17, %s2112_s17   ;;  %s1570_s16 = sphi %s1627_s16, %s2111_s16   ;;  %s1566_s15 = sphi %s1625_s15, %s2110_s15  }
   0xa   : > { %p59_p0 = scmp.ne.s32.totalorder %s1570_s16, %s1566_s15  ;;  %p1659_p1 = scmp.eq.s32.totalorder %s1101_s21, 0 }
   0xb   : > { %p1663_p2 = scmp.eq.s32.totalorder %s1101_s21, 1  ;;  %p133_p3 = scmp.eq.s32.totalorder %s1102_s22, 1 }
   0xc   : > { %s2097_s23 = scalar_select %p1659_p1, 1, 0 }
   0xd   : > { %p1669_p4 = por %p1659_p1, %p59_p0  ;;  %p1103_p5 = scmp.ge.s32.totalorder %s1586_s20, 1 }
   0xe   : > { %p1674_p6 = por %p133_p3, %p59_p0  ;;  %p168_p7 = scmp.lt.s32.totalorder %s1586_s20, 3 }
   0xf   : > { %s2099_s25 = scalar_select %p1669_p4, 1, 0 }
  0x10   : > { %s2100_s26 = scalar_select %p1674_p6, 1, 0 }
  0x11   : > { %p1679_p8 = pnand %p1103_p5, %p168_p7  ;;  %s1588_s28 = smov [#allocation5]  }
  0x12   : > { %s180_s29 = sshll.u32 %s1588_s28, 4  ;;  %s1589_s5 = smov [#allocation7]   ;;  %s1683_s29 = int_to_ptr.vmem [resolvable:$true] %s180_s29 }
  0x13   : > { %p1260_p9 = pneg %p1679_p8  ;;  %s194_s6 = sshll.u32 %s1589_s5, 4  ;;  %s1694_s6 = int_to_ptr.vmem [resolvable:$true] %s194_s6 }
  0x14   : > { %s1382_s9 = scalar_lea.hbm %s2089_s1, 2048 }
  0x15   : > { %p1690_p11 = pnand %p1260_p9, %p1659_p1  ;;  %p1383_p12 = scmp.ne.s32.totalorder %s2089_s1, %s1382_s9 }
  0x16   : > { %p1389_p5 = scmp.lt.u32.totalorder %s1382_s9, %s2089_s1 }
  0x17   : > { %p1384_p13 = pneg %p1690_p11 }
  0x19   : > { %p1385_p0 = pnand %p1384_p13, %p1383_p12 }
  0x1b   : > { %p1386_p3 = pneg %p1385_p0 }
  0x1d   : > { %p1391_p7 = pnand %p1389_p5, %p1386_p3 }
  0x1f   : > { %1394 = shalt.err (!%p1391_p7)
}
  0x20   : > { %s1395_s14 = scalar_lea.vmem %s1683_s29, 2048  ;;  %p1403_p1 = scmp.lt.s32.totalorder %s1683_s29, %s1683_s29 }
  0x21   : > { %p1396_p9 = scmp.ne.s32.totalorder %s1683_s29, %s1395_s14  ;;  %p1404_p12 = scmp.lt.s32.totalorder %s1395_s14, %s1395_s14 }
  0x23   : > { %p1398_p10 = pnand %p1396_p9, %p1384_p13  ;;  %p1405_p0 = por %p1404_p12, %p1403_p1 }
  0x25   : > { %p1399_p6 = pneg %p1398_p10 }
  0x27   : > { %p1406_p4 = pnand %p1405_p0, %p1399_p6 }
  0x29   : > { %1409 = shalt.err (!%p1406_p4)
}
  0x2a   : > { %s1590_s21 = smov 128   ;;  %s1591_s22 = smov 8  }
  0x2b   : > { %1263 = dma.hbm_to_vmem [thread:$0]  (!%p1690_p11), %s2089_s1, 2048, %s1683_s29, [#allocation6], %s1590_s21, %s1590_s21, %s1591_s22  }
  0x2c   : > { %s1410_s9 = scalar_lea.hbm %s2090_s2, 32 }
  0x2d   : > { %p1411_p1 = scmp.ne.s32.totalorder %s2090_s2, %s1410_s9  ;;  %p1417_p10 = scmp.lt.u32.totalorder %s1410_s9, %s2090_s2 }
  0x2f   : > { %p1413_p4 = pnand %p1411_p1, %p1384_p13 }
  0x31   : > { %p1414_p6 = pneg %p1413_p4 }
  0x33   : > { %p1419_p3 = pnand %p1417_p10, %p1414_p6 }
  0x35   : > { %1422 = shalt.err (!%p1419_p3)
}
  0x36   : > { %s1423_s29 = scalar_lea.vmem %s1694_s6, 32  ;;  %p1431_p12 = scmp.lt.s32.totalorder %s1694_s6, %s1694_s6 }
  0x37   : > { %p1424_p5 = scmp.ne.s32.totalorder %s1694_s6, %s1423_s29  ;;  %p1432_p0 = scmp.lt.s32.totalorder %s1423_s29, %s1423_s29 }
  0x39   : > { %p1426_p7 = pnand %p1424_p5, %p1384_p13  ;;  %p1433_p1 = por %p1432_p0, %p1431_p12 }
  0x3b   : > { %p1427_p9 = pneg %p1426_p7 }
  0x3d   : > { %p1434_p4 = pnand %p1433_p1, %p1427_p9 }
  0x3f   : > { %1437 = shalt.err (!%p1434_p4)
}
  0x40   : > { %1266 = dma.hbm_to_vmem [thread:$0]  (!%p1690_p11), %s2090_s2, 32, %s1694_s6, [#allocation6]  }
  0x41   : > { %s37_s22 = sadd.s32 1, %s1582_s19  ;;  %s46_s28 = sadd.s32 1, %s1574_s17 }
  0x42   : > { %p39_p13 = scmp.ge.s32.totalorder %s37_s22, 2  ;;  %p53_p6 = scmp.ne.s32.totalorder %s1574_s17, %s1570_s16 }
  0x43   : > { %p54_p10 = scmp.eq.s32.totalorder %s1586_s20, 0  ;;  %p1280_p3 = scmp.lt.s32.totalorder %s1586_s20, 2 }
  0x44   : > { %s2116_s22 = smov (%p39_p13, %s37_s22), 0  ;;  %p1758_p7 = por %p1663_p2, %p53_p6 }
  0x45   : > { %p55_p5 = por %p54_p10, %p53_p6  ;;  %s41_s5 = ssub.s32 %s1582_s19, %s2116_s22 }
  0x46   : > { %s2103_s30 = scalar_select %p1758_p7, 1, 0 }
  0x47   : > { %s205_s7 = sand.u32 1, %s1574_s17   ;;  %p44_p9 = scmp.eq.s32.totalorder %s41_s5, 0 }
  0x48   : > { %s1107_s6 = sshll.u32 %s205_s7, 7  ;;  %s1180_s8 = sshll.u32 %s1582_s19, 11 }
  0x49   : > { %s1767_s9 = scalar_select %p44_p9, %s1574_s17, %s46_s28  }
  0x4a   : > { %s1772_s12 = scalar_lea.hbm %s2088_s0, %s1180_s8  ;;  %s209_s24 = scalar_lea.vmem [#allocation2], %s1107_s6 }
  0x4b   : > { %s218_s13 = sshll.u32 %s209_s24, 4  ;;  %p1776_p2 = pnand %p1280_p3, %p55_p5  ;;  %s1780_s13 = int_to_ptr.vmem [resolvable:$true] %s218_s13 }
  0x4c   : > { %s1782_s14 = scalar_lea.sflag [#allocation3], %s205_s7  ;;  %s1438_s21 = scalar_lea.hbm %s1772_s12, 2048 }
  0x4d   : > { %p1439_p11 = scmp.ne.s32.totalorder %s1772_s12, %s1438_s21  ;;  %p1440_p12 = pneg %p1776_p2 }
  0x4e   : > { %s1443_s6 = scalar_lea.hbm %s2088_s0, 4096  ;;  %p1444_p4 = scmp.lt.u32.totalorder %s1772_s12, %s2088_s0 }
  0x4f   : > { %p1441_p0 = pnand %p1440_p12, %p1439_p11  ;;  %p1445_p13 = scmp.lt.u32.totalorder %s1443_s6, %s1438_s21 }
  0x50   : > { %p1447_p10 = scmp.lt.u32.totalorder %s1438_s21, %s1772_s12 }
  0x51   : > { %p1442_p1 = pneg %p1441_p0  ;;  %p1446_p6 = por %p1445_p13, %p1444_p4 }
  0x53   : > { %p1448_p3 = por %p1447_p10, %p1446_p6 }
  0x55   : > { %p1449_p5 = pnand %p1448_p3, %p1442_p1 }
  0x57   : > { %1452 = shalt.err (!%p1449_p5)
}
  0x58   : > { %s1453_s7 = scalar_lea.vmem %s1780_s13, 2048  ;;  %s1592_s11 = smov [#allocation2]  }
  0x59   : > { %p1454_p9 = scmp.ne.s32.totalorder %s1780_s13, %s1453_s7  ;;  %s1458_s24 = sshll.u32 %s1592_s11, 4  ;;  %s1459_s24 = int_to_ptr.vmem [resolvable:$false] %s1458_s24 }
  0x5a   : > { %s1460_s28 = scalar_lea.vmem %s1459_s24, 4096  ;;  %p1461_p7 = scmp.lt.s32.totalorder %s1780_s13, %s1459_s24 }
  0x5b   : > { %p1456_p11 = pnand %p1454_p9, %p1440_p12  ;;  %p1462_p4 = scmp.lt.s32.totalorder %s1460_s28, %s1453_s7 }
  0x5d   : > { %p1457_p0 = pneg %p1456_p11  ;;  %p1463_p13 = por %p1462_p4, %p1461_p7 }
  0x5f   : > { %p1464_p6 = pnand %p1463_p13, %p1457_p0 }
  0x61   : > { %1467 = shalt.err (!%p1464_p6)
}
  0x62   : > { %s1593_s21 = smov 64   ;;  %s1594_s5 = smov 4  }
  0x63   : > { %1270 = dma.hbm_to_vmem [thread:$0]  (!%p1776_p2), %s1772_s12, 2048, %s1780_s13, %s1782_s14, %s1593_s21, %s1593_s21, %s1594_s5  }
  0x64   : > { %230 = sbr.rel (%p1679_p8) target bundleno = 600 (0x258), region = 32  ;;  %s1813_s6 = sand.u32 (!%p1679_p8), 1, %s1570_s16  }
  0x65   : > { %s1111_s8 = sshll.u32 (!%p1679_p8), %s1813_s6, 7  ;;  %s233_s10 = scalar_lea.sflag (!%p1679_p8), [#allocation3], %s1813_s6 }
  0x66   : > { %s1817_s7 = scalar_lea.vmem (!%p1679_p8), [#allocation2], %s1111_s8  ;;  %p2105_p7 = scmp.ne.s32.totalorder (!%p1679_p8), %s2099_s25, 0 }
  0x6b   : > { %1549 = dma.done.wait (%p2105_p7), %s233_s10, 2048  }
  0x6c   : > { %1551 = vsyncadd (%p2105_p7), %s233_s10, 4294965248  ;;  %p2106_p2 = scmp.ne.s32.totalorder %s2097_s23, 0 }
  0x6e   : > { %1553 = dma.done.wait (%p2106_p2), [#allocation6], 2080  }
  0x6f   : > { %1555 = vsyncadd (%p2106_p2), [#allocation6], 4294965216  ;;  %v1595_v0 = vmov 0   ;;  %v1342_v1 = vld [vmem:[#allocation5 + $0x4] ss:$8 sps:$4 sm:$0xff]   ;;  %v1370_v21 = vld [vmem:[%s1817_s7 + $0x10] sm:$0xff]   ;;  %v744_v57 = vlaneseq }
  0x70   : > { %533 = vmatprep.mubr.bf16.mxu0 %v1595_v0  ;;  %613 = vmatprep.mubr.bf16.mxu1 %v1595_v0  ;;  %v1344_v2 = vld [vmem:[#allocation5] ss:$8 sps:$4 sm:$0xff]   ;;  %v1345_v3 = vld [vmem:[#allocation5 + $0x14] ss:$8 sps:$4 sm:$0xff]   ;;  %v1347_v4 = vld [vmem:[#allocation5 + $0x10] ss:$8 sps:$4 sm:$0xff]  }
  0x71   : > { %501 = vmatprep.subr.bf16.mxu0 %v1342_v1  ;;  %1230 = vmatprep.subr.bf16.mxu1 %v1342_v1  ;;  %v1348_v5 = vld [vmem:[#allocation5 + $0x24] ss:$8 sps:$4 sm:$0xff]   ;;  %v1350_v6 = vld [vmem:[#allocation5 + $0x20] ss:$8 sps:$4 sm:$0xff]   ;;  %v1351_v7 = vld [vmem:[#allocation5 + $0x34] ss:$8 sps:$4 sm:$0xff]  }
  0x72   : > { %502 = vmatpush1.bf16.msra.mxu0 %v1344_v2  ;;  %1238 = vmatpush1.bf16.msra.mxu1 %v1344_v2  ;;  %v1353_v8 = vld [vmem:[#allocation5 + $0x30] ss:$8 sps:$4 sm:$0xff]   ;;  %v1354_v9 = vld [vmem:[#allocation5 + $0x44] ss:$8 sps:$4 sm:$0xff]   ;;  %v1356_v10 = vld [vmem:[#allocation5 + $0x40] ss:$8 sps:$4 sm:$0xff]  }
  0x73   : > { %503 = vmatprep.subr.bf16.mxu0 %v1345_v3  ;;  %1231 = vmatprep.subr.bf16.mxu1 %v1345_v3  ;;  %v1357_v11 = vld [vmem:[#allocation5 + $0x54] ss:$8 sps:$4 sm:$0xff]   ;;  %v1359_v12 = vld [vmem:[#allocation5 + $0x50] ss:$8 sps:$4 sm:$0xff]   ;;  %v1360_v13 = vld [vmem:[#allocation5 + $0x64] ss:$8 sps:$4 sm:$0xff]  }
  0x74   : > { %v1362_v14 = vld [vmem:[#allocation5 + $0x60] ss:$8 sps:$4 sm:$0xff]   ;;  %v1363_v15 = vld [vmem:[#allocation5 + $0x74] ss:$8 sps:$4 sm:$0xff]   ;;  %v1365_v16 = vld [vmem:[#allocation5 + $0x70] ss:$8 sps:$4 sm:$0xff]  }
  0x75   : > { %v1366_v17 = vld [vmem:[%s1817_s7] sm:$0xff]   ;;  %v1368_v19 = vld [vmem:[%s1817_s7 + $0x8] sm:$0xff]   ;;  %v1371_v22 = vld [vmem:[%s1817_s7 + $0x50] sm:$0xff]   ;;  %v745_v62 = vshrl.u32 %v744_v57, 7  ;;  %s1115_s23 = sshll.u32 %s1813_s6, 5  ;;  %s1206_s12 = sshll.u32 %s1578_s18, 9 }
  0x76   : > { %504 = vmatpush1.bf16.msra.mxu0 %v1347_v4  ;;  %1239 = vmatpush1.bf16.msra.mxu1 %v1347_v4  ;;  %v1367_v18 = vld [vmem:[%s1817_s7 + $0x40] sm:$0xff]   ;;  %v1369_v20 = vld [vmem:[%s1817_s7 + $0x48] sm:$0xff]   ;;  %v1372_v23 = vld [vmem:[%s1817_s7 + $0x18] sm:$0xff]   ;;  %s1922_s25 = scalar_lea.vmem [#allocation9], %s1115_s23  ;;  %s1965_s14 = scalar_lea.hbm %s2092_s4, %s1206_s12 }
  0x77   : > { %505 = vmatprep.subr.bf16.mxu0 %v1348_v5  ;;  %1232 = vmatprep.subr.bf16.mxu1 %v1348_v5  ;;  %v1373_v24 = vld [vmem:[%s1817_s7 + $0x58] sm:$0xff]   ;;  %v1374_v25 = vld [vmem:[%s1817_s7 + $0x20] sm:$0xff]   ;;  %v1376_v27 = vld [vmem:[%s1817_s7 + $0x28] sm:$0xff]   ;;  %v746_v3 = vsub.s32 0, %v745_v62  ;;  %s961_s27 = sshll.u32 %s1922_s25, 4  ;;  %s929_s11 = scalar_lea.sflag [#allocation10], %s1813_s6  ;;  %s1959_s27 = int_to_ptr.vmem [resolvable:$true] %s961_s27 }
  0x78   : > { %v1375_v26 = vld [vmem:[%s1817_s7 + $0x60] sm:$0xff]   ;;  %v1377_v28 = vld [vmem:[%s1817_s7 + $0x68] sm:$0xff]   ;;  %v1378_v29 = vld [vmem:[%s1817_s7 + $0x30] sm:$0xff]   ;;  %s1468_s24 = scalar_lea.vmem %s1959_s27, 512  ;;  %p2107_p12 = scmp.ne.s32.totalorder %s2103_s30, 0 }
  0x79   : > { %v1379_v30 = vld [vmem:[%s1817_s7 + $0x70] sm:$0xff]   ;;  %v1380_v31 = vld [vmem:[%s1817_s7 + $0x38] sm:$0xff]   ;;  %v742_v4 = vld [vmem:[#allocation7] sm:$0x3]  ;;  %p1469_p8 = scmp.ne.s32.totalorder %s1959_s27, %s1468_s24  ;;  %s1596_s28 = smov [#allocation9]  }
  0x7a   : > { %506 = vmatpush1.bf16.msra.mxu0 %v1350_v6  ;;  %1240 = vmatpush1.bf16.msra.mxu1 %v1350_v6  ;;  %v1381_v32 = vld [vmem:[%s1817_s7 + $0x78] sm:$0xff]   ;;  %s1472_s21 = sshll.u32 %s1596_s28, 4  ;;  %s1473_s21 = int_to_ptr.vmem [resolvable:$false] %s1472_s21 }
  0x7b   : > { %507 = vmatprep.subr.bf16.mxu0 %v1351_v7  ;;  %1233 = vmatprep.subr.bf16.mxu1 %v1351_v7  ;;  %v750_v7 = vsub.s32 1, %v745_v62  ;;  %p1470_p1 = pnand %p1469_p8, %p2107_p12  ;;  %s1474_s5 = scalar_lea.vmem %s1473_s21, 1024 }
  0x7c   : > { %p1475_p3 = scmp.lt.s32.totalorder %s1959_s27, %s1473_s21  ;;  %p1476_p5 = scmp.lt.s32.totalorder %s1474_s5, %s1468_s24 }
  0x7d   : > { %p1471_p10 = pneg %p1470_p1 }
  0x7e   : > { %508 = vmatpush1.bf16.msra.mxu0 %v1353_v8  ;;  %1241 = vmatpush1.bf16.msra.mxu1 %v1353_v8  ;;  %p1477_p9 = por %p1476_p5, %p1475_p3 }
  0x7f   : > { %509 = vmatprep.subr.bf16.mxu0 %v1354_v9  ;;  %1234 = vmatprep.subr.bf16.mxu1 %v1354_v9 }
  0x80   : > { %p1478_p11 = pnand %p1477_p9, %p1471_p10 }
  0x82   : > { %510 = vmatpush1.bf16.msra.mxu0 %v1356_v10  ;;  %1242 = vmatpush1.bf16.msra.mxu1 %v1356_v10 }
  0x83   : > { %511 = vmatprep.subr.bf16.mxu0 %v1357_v11  ;;  %1235 = vmatprep.subr.bf16.mxu1 %v1357_v11 }
  0x86   : > { %512 = vmatpush1.bf16.msra.mxu0 %v1359_v12  ;;  %1243 = vmatpush1.bf16.msra.mxu1 %v1359_v12  ;;  %v1907_v12 = vrot.slane %v742_v4, %v746_v3 }
  0x87   : > { %513 = vmatprep.subr.bf16.mxu0 %v1360_v13  ;;  %1236 = vmatprep.subr.bf16.mxu1 %v1360_v13 }
  0x8a   : > { %514 = vmatpush1.bf16.msra.mxu0 %v1362_v14  ;;  %1244 = vmatpush1.bf16.msra.mxu1 %v1362_v14 }
  0x8b   : > { %515 = vmatprep.subr.bf16.mxu0 %v1363_v15  ;;  %1237 = vmatprep.subr.bf16.mxu1 %v1363_v15 }
  0x8e   : > { %516 = vmatpush1.bf16.msra.mxu0 %v1365_v16  ;;  %1245 = vmatpush1.bf16.msra.mxu1 %v1365_v16 }
  0x91   : > { %534 = vmatmul.mubr.bf16.vlgmr.msra.gmra.mrb[0].mxu0 %v1366_v17  ;;  %614 = vmatmul.mubr.bf16.vlgmr.msra.gmra.mrb[0].mxu1 %v1367_v18 }
  0x92   : > { %543 = vmatprep.mubr.bf16.mxu0 %v1595_v0  ;;  %623 = vmatprep.mubr.bf16.mxu1 %v1595_v0 }
  0x99   : > { %544 = vmatmul.mubr.bf16.gmra.mrb[4].mxu0 %v1368_v19  ;;  %624 = vmatmul.mubr.bf16.gmra.mrb[4].mxu1 %v1369_v20 }
  0x9a   : > { %553 = vmatprep.mubr.bf16.mxu0 %v1595_v0  ;;  %633 = vmatprep.mubr.bf16.mxu1 %v1595_v0 }
  0xa1   : > { %554 = vmatmul.mubr.bf16.gmra.mrb[8].mxu0 %v1370_v21  ;;  %634 = vmatmul.mubr.bf16.gmra.mrb[8].mxu1 %v1371_v22 }
  0xa2   : > { %563 = vmatprep.mubr.bf16.mxu0 %v1595_v0  ;;  %643 = vmatprep.mubr.bf16.mxu1 %v1595_v0 }
  0xa9   : > { %564 = vmatmul.mubr.bf16.gmra.mrb[12].mxu0 %v1372_v23  ;;  %644 = vmatmul.mubr.bf16.gmra.mrb[12].mxu1 %v1373_v24  ;;  %v1909_v23 = vrot.slane %v742_v4, %v750_v7 }
  0xaa   : > { %573 = vmatprep.mubr.bf16.mxu0 %v1595_v0  ;;  %653 = vmatprep.mubr.bf16.mxu1 %v1595_v0 }
  0xb1   : > { %574 = vmatmul.mubr.bf16.gmra.mrb[16].mxu0 %v1374_v25  ;;  %654 = vmatmul.mubr.bf16.gmra.mrb[16].mxu1 %v1375_v26 }
  0xb2   : > { %583 = vmatprep.mubr.bf16.mxu0 %v1595_v0  ;;  %663 = vmatprep.mubr.bf16.mxu1 %v1595_v0 }
  0xb9   : > { %584 = vmatmul.mubr.bf16.gmra.mrb[20].mxu0 %v1376_v27  ;;  %664 = vmatmul.mubr.bf16.gmra.mrb[20].mxu1 %v1377_v28 }
  0xba   : > { %593 = vmatprep.mubr.bf16.mxu0 %v1595_v0  ;;  %673 = vmatprep.mubr.bf16.mxu1 %v1595_v0 }
  0xc1   : > { %594 = vmatmul.mubr.bf16.gmra.mrb[24].mxu0 %v1378_v29  ;;  %674 = vmatmul.mubr.bf16.gmra.mrb[24].mxu1 %v1379_v30 }
  0xc2   : > { %603 = vmatprep.mubr.bf16.mxu0 %v1595_v0  ;;  %683 = vmatprep.mubr.bf16.mxu1 %v1595_v0 }
  0xc9   : > { %604 = vmatmul.mubr.bf16.gmra.mrb[28].mxu0 %v1380_v31  ;;  %684 = vmatmul.mubr.bf16.gmra.mrb[28].mxu1 %v1381_v32 }
 0x164   : > { %v535_v33 = vpop.f32.mrb[0].mxu0  ;;  %v615_v34 = vpop.f32.mrb[0].mxu1 }
 0x165   : > { %v537_v35 = vpop.f32.mrb[1].mxu0  ;;  %v617_v36 = vpop.f32.mrb[1].mxu1 }
 0x166   : > { %v539_v37 = vpop.f32.mrb[2].mxu0  ;;  %v619_v38 = vpop.f32.mrb[2].mxu1 }
 0x167   : > { %v541_v39 = vpop.f32.mrb[3].mxu0  ;;  %v621_v40 = vpop.f32.mrb[3].mxu1 }
 0x16c   : > { %v1859_v41 = vpop.f32.mrb[4].mxu0  ;;  %v1861_v42 = vpop.f32.mrb[4].mxu1 }
 0x16d   : > { %v1863_v43 = vpop.f32.mrb[5].mxu0  ;;  %v1865_v44 = vpop.f32.mrb[5].mxu1 }
 0x16e   : > { %v1867_v45 = vpop.f32.mrb[6].mxu0  ;;  %v1869_v46 = vpop.f32.mrb[6].mxu1 }
 0x16f   : > { %v1871_v47 = vpop.f32.mrb[7].mxu0  ;;  %v1873_v48 = vpop.f32.mrb[7].mxu1 }
 0x174   : > { %v1875_v49 = vpop.f32.mrb[8].mxu0  ;;  %v1877_v50 = vpop.f32.mrb[8].mxu1 }
 0x175   : > { %v1879_v51 = vpop.f32.mrb[9].mxu0  ;;  %v1881_v52 = vpop.f32.mrb[9].mxu1 }
 0x176   : > { %v1883_v53 = vpop.f32.mrb[10].mxu0  ;;  %v1885_v54 = vpop.f32.mrb[10].mxu1 }
 0x177   : > { %v1887_v55 = vpop.f32.mrb[11].mxu0  ;;  %v1889_v56 = vpop.f32.mrb[11].mxu1 }
 0x17c   : > { %v1891_v58 = vpop.f32.mrb[12].mxu0  ;;  %v1893_v59 = vpop.f32.mrb[12].mxu1 }
 0x17d   : > { %v1895_v60 = vpop.f32.mrb[13].mxu0  ;;  %v1897_v61 = vpop.f32.mrb[13].mxu1 }
 0x17e   : > { %v1899_v63 = vpop.f32.mrb[14].mxu0  ;;  %v1901_v0 = vpop.f32.mrb[14].mxu1 }
 0x17f   : > { %v1903_v1 = vpop.f32.mrb[15].mxu0  ;;  %v1905_v2 = vpop.f32.mrb[15].mxu1 }
 0x184   : > { %v575_v5 = vpop.f32.mrb[16].mxu0  ;;  %v655_v6 = vpop.f32.mrb[16].mxu1 }
 0x185   : > { %v694_v8 = vmax.f32 %v535_v33, %v575_v5  ;;  %v710_v9 = vmax.f32 %v615_v34, %v655_v6  ;;  %v577_v10 = vpop.f32.mrb[17].mxu0  ;;  %v657_v11 = vpop.f32.mrb[17].mxu1 }
 0x186   : > { %v695_v13 = vmax.f32 %v537_v35, %v577_v10  ;;  %v711_v14 = vmax.f32 %v617_v36, %v657_v11  ;;  %v579_v15 = vpop.f32.mrb[18].mxu0  ;;  %v659_v16 = vpop.f32.mrb[18].mxu1 }
 0x187   : > { %v696_v17 = vmax.f32 %v539_v37, %v579_v15  ;;  %v712_v18 = vmax.f32 %v619_v38, %v659_v16  ;;  %v581_v19 = vpop.f32.mrb[19].mxu0  ;;  %v661_v20 = vpop.f32.mrb[19].mxu1  ;;  %v726_v21 = vmax.f32 %v694_v8, %v710_v9 }
 0x188   : > { %v727_v22 = vmax.f32 %v695_v13, %v711_v14  ;;  %v697_v24 = vmax.f32 %v541_v39, %v581_v19  ;;  %v713_v25 = vmax.f32 %v621_v40, %v661_v20 }
 0x189   : > { %v728_v26 = vmax.f32 %v696_v17, %v712_v18  ;;  %v754_v27 = vadd.f32 %v1907_v12, %v726_v21 }
 0x18a   : > { %v729_v28 = vmax.f32 %v697_v24, %v713_v25  ;;  %v755_v29 = vadd.f32 %v1909_v23, %v727_v22 }
 0x18b   : > { %770 = vxpose.xlu0.b32.start [1/8] (short) %v754_v27, 128  ;;  %v756_v37 = vadd.f32 %v1907_v12, %v728_v26 }
 0x18c   : > { %v757_v30 = vadd.f32 %v1909_v23, %v729_v28  ;;  %v585_v31 = vpop.f32.mrb[20].mxu0  ;;  %v665_v32 = vpop.f32.mrb[20].mxu1 }
 0x18d   : > { %v698_v33 = vmax.f32 %v1859_v41, %v585_v31  ;;  %v714_v34 = vmax.f32 %v1861_v42, %v665_v32  ;;  %v587_v35 = vpop.f32.mrb[21].mxu0  ;;  %v667_v36 = vpop.f32.mrb[21].mxu1 }
 0x18e   : > { %v1210_v38 = vpack.c.bf16 %v757_v30, %v755_v29  ;;  %v699_v39 = vmax.f32 %v1863_v43, %v587_v35  ;;  %v715_v40 = vmax.f32 %v1865_v44, %v667_v36  ;;  %v589_v57 = vpop.f32.mrb[22].mxu0  ;;  %v669_v62 = vpop.f32.mrb[22].mxu1 }
 0x18f   : > { %v730_v3 = vmax.f32 %v698_v33, %v714_v34  ;;  %v700_v4 = vmax.f32 %v1867_v45, %v589_v57  ;;  %v716_v5 = vmax.f32 %v1869_v46, %v669_v62  ;;  %v671_v6 = vpop.f32.mrb[23].mxu1  ;;  %771 = vxpose.xlu0.b32.cont [2/8] (short) %v756_v37, 128  ;;  %v591_v41 = vpop.f32.mrb[23].mxu0 }
 0x190   : > { %1211 = vst [vmem:[%s1922_s25] sm:$0xff] %v1210_v38   ;;  %v731_v42 = vmax.f32 %v699_v39, %v715_v40  ;;  %v717_v7 = vmax.f32 %v1873_v48, %v671_v6  ;;  %v701_v43 = vmax.f32 %v1871_v47, %v591_v41 }
 0x191   : > { %v732_v44 = vmax.f32 %v700_v4, %v716_v5  ;;  %v758_v8 = vadd.f32 %v1907_v12, %v730_v3 }
 0x192   : > { %v733_v9 = vmax.f32 %v701_v43, %v717_v7  ;;  %v759_v45 = vadd.f32 %v1909_v23, %v731_v42 }
 0x193   : > { %772 = vxpose.xlu0.b32.cont [3/8] (short) %v758_v8, 128  ;;  %v760_v47 = vadd.f32 %v1907_v12, %v732_v44 }
 0x194   : > { %v761_v46 = vadd.f32 %v1909_v23, %v733_v9  ;;  %v595_v10 = vpop.f32.mrb[24].mxu0  ;;  %v675_v11 = vpop.f32.mrb[24].mxu1 }
 0x195   : > { %v702_v13 = vmax.f32 %v1875_v49, %v595_v10  ;;  %v718_v14 = vmax.f32 %v1877_v50, %v675_v11  ;;  %v597_v15 = vpop.f32.mrb[25].mxu0  ;;  %v677_v48 = vpop.f32.mrb[25].mxu1 }
 0x196   : > { %v1215_v16 = vpack.c.bf16 %v761_v46, %v759_v45  ;;  %v703_v17 = vmax.f32 %v1879_v51, %v597_v15  ;;  %v719_v18 = vmax.f32 %v1881_v52, %v677_v48  ;;  %v599_v19 = vpop.f32.mrb[26].mxu0  ;;  %v679_v20 = vpop.f32.mrb[26].mxu1 }
 0x197   : > { %v734_v21 = vmax.f32 %v702_v13, %v718_v14  ;;  %v704_v22 = vmax.f32 %v1883_v53, %v599_v19  ;;  %v720_v24 = vmax.f32 %v1885_v54, %v679_v20  ;;  %v681_v49 = vpop.f32.mrb[27].mxu1  ;;  %773 = vxpose.xlu0.b32.cont [4/8] (short) %v760_v47, 128  ;;  %v601_v25 = vpop.f32.mrb[27].mxu0 }
 0x198   : > { %1227 = vst [vmem:[%s1922_s25 + $0x8] sm:$0xff] %v1215_v16   ;;  %v735_v50 = vmax.f32 %v703_v17, %v719_v18  ;;  %v721_v26 = vmax.f32 %v1889_v56, %v681_v49  ;;  %v705_v27 = vmax.f32 %v1887_v55, %v601_v25 }
 0x199   : > { %v736_v28 = vmax.f32 %v704_v22, %v720_v24  ;;  %v762_v51 = vadd.f32 %v1907_v12, %v734_v21 }
 0x19a   : > { %v737_v52 = vmax.f32 %v705_v27, %v721_v26  ;;  %v763_v29 = vadd.f32 %v1909_v23, %v735_v50 }
 0x19b   : > { %774 = vxpose.xlu0.b32.cont [5/8] (short) %v762_v51, 128  ;;  %v764_v55 = vadd.f32 %v1907_v12, %v736_v28 }
 0x19c   : > { %v765_v53 = vadd.f32 %v1909_v23, %v737_v52  ;;  %v605_v30 = vpop.f32.mrb[28].mxu0  ;;  %v685_v54 = vpop.f32.mrb[28].mxu1 }
 0x19d   : > { %v706_v31 = vmax.f32 %v1891_v58, %v605_v30  ;;  %v722_v32 = vmax.f32 %v1893_v59, %v685_v54  ;;  %v607_v33 = vpop.f32.mrb[29].mxu0  ;;  %v687_v56 = vpop.f32.mrb[29].mxu1 }
 0x19e   : > { %v1220_v34 = vpack.c.bf16 %v765_v53, %v763_v29  ;;  %v707_v35 = vmax.f32 %v1895_v60, %v607_v33  ;;  %v723_v36 = vmax.f32 %v1897_v61, %v687_v56  ;;  %v609_v37 = vpop.f32.mrb[30].mxu0  ;;  %v689_v38 = vpop.f32.mrb[30].mxu1 }
 0x19f   : > { %v738_v39 = vmax.f32 %v706_v31, %v722_v32  ;;  %v708_v40 = vmax.f32 %v1899_v63, %v609_v37  ;;  %v724_v57 = vmax.f32 %v1901_v0, %v689_v38  ;;  %v691_v58 = vpop.f32.mrb[31].mxu1  ;;  %775 = vxpose.xlu0.b32.cont [6/8] (short) %v764_v55, 128  ;;  %v611_v59 = vpop.f32.mrb[31].mxu0 }
 0x1a0   : > { %1228 = vst [vmem:[%s1922_s25 + $0x10] sm:$0xff] %v1220_v34   ;;  %v739_v62 = vmax.f32 %v707_v35, %v723_v36  ;;  %v725_v3 = vmax.f32 %v1905_v2, %v691_v58  ;;  %v709_v60 = vmax.f32 %v1903_v1, %v611_v59 }
 0x1a1   : > { %v740_v61 = vmax.f32 %v708_v40, %v724_v57  ;;  %v766_v4 = vadd.f32 %v1907_v12, %v738_v39 }
 0x1a2   : > { %v741_v63 = vmax.f32 %v709_v60, %v725_v3  ;;  %v767_v0 = vadd.f32 %v1909_v23, %v739_v62 }
 0x1a3   : > { %776 = vxpose.xlu0.b32.cont [7/8] (short) %v766_v4, 128  ;;  %v768_v6 = vadd.f32 %v1907_v12, %v740_v61 }
 0x1a4   : > { %v769_v5 = vadd.f32 %v1909_v23, %v741_v63 }
 0x1a6   : > { %v1225_v41 = vpack.c.bf16 %v769_v5, %v767_v0 }
 0x1a7   : > { %777 = vxpose.xlu0.b32.end [8/8] (short) %v768_v6, 128 }
 0x1a8   : > { %1229 = vst [vmem:[%s1922_s25 + $0x18] sm:$0xff] %v1225_v41  }
 0x1a9   : > { %1481 = shalt.err (!%p1478_p11)
}
 0x1aa   : > { %s1482_s8 = scalar_lea.hbm %s1965_s14, 512  ;;  %s1486_s23 = scalar_lea.hbm %s2092_s4, 1024 }
 0x1ab   : > { %p1483_p0 = scmp.ne.s32.totalorder %s1965_s14, %s1482_s8  ;;  %p1487_p6 = scmp.lt.u32.totalorder %s1965_s14, %s2092_s4 }
 0x1ac   : > { %p1488_p7 = scmp.lt.u32.totalorder %s1486_s23, %s1482_s8  ;;  %p1490_p8 = scmp.lt.u32.totalorder %s1482_s8, %s1965_s14 }
 0x1ad   : > { %p1484_p4 = pnand %p1483_p0, %p2107_p12 }
 0x1ae   : > { %p1489_p2 = por %p1488_p7, %p1487_p6 }
 0x1af   : > { %p1485_p13 = pneg %p1484_p4 }
 0x1b0   : > { %p1491_p1 = por %p1490_p8, %p1489_p2 }
 0x1b2   : > { %p1492_p10 = pnand %p1491_p1, %p1485_p13 }
 0x1b4   : > { %1495 = shalt.err (!%p1492_p10)
}
 0x1b5   : > { %s1597_s13 = smov 64   ;;  %s1598_s29 = smov 4   ;;  %vm866_vm0 = vcmask 519168  }
 0x1b6   : > { %1257 = dma.vmem_to_hbm [thread:$0]  (%p2107_p12), %s1959_s27, 512, %s1965_s14, %s929_s11, %s1597_s13, %s1597_s13, %s1598_s29  }
 0x1b7   : > { %s1114_s24 = sshll.u32 %s1813_s6, 6  ;;  %s1205_s27 = sshll.u32 %s1578_s18, 10 }
 0x1b8   : > { %s1995_s28 = scalar_lea.vmem [#allocation8], %s1114_s24  ;;  %s2032_s5 = scalar_lea.hbm %s2091_s3, %s1205_s27 }
 0x1b9   : > { %s943_s14 = sshll.u32 %s1995_s28, 4  ;;  %s924_s8 = scalar_lea.sflag [#allocation4], %s1813_s6  ;;  %s2034_s14 = int_to_ptr.vmem [resolvable:$true] %s943_s14 }
 0x1ba   : > { %s1496_s10 = scalar_lea.vmem %s2034_s14, 1024  ;;  %s1599_s18 = smov [#allocation8]  }
 0x1bb   : > { %p1497_p3 = scmp.ne.s32.totalorder %s2034_s14, %s1496_s10  ;;  %s1500_s7 = sshll.u32 %s1599_s18, 4  ;;  %s1501_s7 = int_to_ptr.vmem [resolvable:$false] %s1500_s7 }
 0x1bc   : > { %s1502_s23 = scalar_lea.vmem %s1501_s7, 2048  ;;  %p1503_p11 = scmp.lt.s32.totalorder %s2034_s14, %s1501_s7 }
 0x1bd   : > { %p1498_p5 = pnand %p1497_p3, %p2107_p12  ;;  %p1504_p0 = scmp.lt.s32.totalorder %s1502_s23, %s1496_s10 }
 0x1bf   : > { %p1499_p9 = pneg %p1498_p5  ;;  %p1505_p4 = por %p1504_p0, %p1503_p11 }
 0x1c1   : > { %p1506_p13 = pnand %p1505_p4, %p1499_p9 }
 0x20b   : > { %v786_v1 = vpop.trf.xlu0 }
 0x20c   : > { %v1181_v2 = vpack.c.bf16 %v786_v1, %v786_v1 }
 0x20e   : > { %867 = vst.msk [vmem:[%s1995_s28] sm:$0xf] %vm866_vm0, %v1181_v2 }
 0x20f   : > { %v787_v12 = vpop.trf.xlu0 }
 0x210   : > { %v1182_v23 = vpack.c.bf16 %v787_v12, %v787_v12 }
 0x212   : > { %868 = vst.msk [vmem:[%s1995_s28 + $0x4] sm:$0xf] %vm866_vm0, %v1182_v23 }
 0x213   : > { %v788_v42 = vpop.trf.xlu0 }
 0x214   : > { %v1183_v7 = vpack.c.bf16 %v788_v42, %v788_v42 }
 0x216   : > { %869 = vst.msk [vmem:[%s1995_s28 + $0x8] sm:$0xf] %vm866_vm0, %v1183_v7 }
 0x217   : > { %v789_v43 = vpop.trf.xlu0 }
 0x218   : > { %v1184_v44 = vpack.c.bf16 %v789_v43, %v789_v43 }
 0x21a   : > { %870 = vst.msk [vmem:[%s1995_s28 + $0xc] sm:$0xf] %vm866_vm0, %v1184_v44 }
 0x21b   : > { %v790_v8 = vpop.trf.xlu0 }
 0x21c   : > { %v1185_v9 = vpack.c.bf16 %v790_v8, %v790_v8 }
 0x21e   : > { %871 = vst.msk [vmem:[%s1995_s28 + $0x10] sm:$0xf] %vm866_vm0, %v1185_v9 }
 0x21f   : > { %v791_v45 = vpop.trf.xlu0 }
 0x220   : > { %v1186_v46 = vpack.c.bf16 %v791_v45, %v791_v45 }
 0x222   : > { %872 = vst.msk [vmem:[%s1995_s28 + $0x14] sm:$0xf] %vm866_vm0, %v1186_v46 }
 0x223   : > { %v792_v10 = vpop.trf.xlu0 }
 0x224   : > { %v1187_v11 = vpack.c.bf16 %v792_v10, %v792_v10 }
 0x226   : > { %873 = vst.msk [vmem:[%s1995_s28 + $0x18] sm:$0xf] %vm866_vm0, %v1187_v11 }
 0x227   : > { %v793_v13 = vpop.trf.xlu0 }
 0x228   : > { %v1188_v14 = vpack.c.bf16 %v793_v13, %v793_v13 }
 0x22a   : > { %874 = vst.msk [vmem:[%s1995_s28 + $0x1c] sm:$0xf] %vm866_vm0, %v1188_v14 }
 0x22b   : > { %v794_v15 = vpop.trf.xlu0 }
 0x22c   : > { %v1189_v48 = vpack.c.bf16 %v794_v15, %v794_v15 }
 0x22e   : > { %875 = vst.msk [vmem:[%s1995_s28 + $0x20] sm:$0xf] %vm866_vm0, %v1189_v48 }
 0x22f   : > { %v795_v47 = vpop.trf.xlu0 }
 0x230   : > { %v1190_v16 = vpack.c.bf16 %v795_v47, %v795_v47 }
 0x232   : > { %876 = vst.msk [vmem:[%s1995_s28 + $0x24] sm:$0xf] %vm866_vm0, %v1190_v16 }
 0x233   : > { %v796_v17 = vpop.trf.xlu0 }
 0x234   : > { %v1191_v18 = vpack.c.bf16 %v796_v17, %v796_v17 }
 0x236   : > { %877 = vst.msk [vmem:[%s1995_s28 + $0x28] sm:$0xf] %vm866_vm0, %v1191_v18 }
 0x237   : > { %v797_v19 = vpop.trf.xlu0 }
 0x238   : > { %v1192_v20 = vpack.c.bf16 %v797_v19, %v797_v19 }
 0x23a   : > { %878 = vst.msk [vmem:[%s1995_s28 + $0x2c] sm:$0xf] %vm866_vm0, %v1192_v20 }
 0x23b   : > { %v798_v21 = vpop.trf.xlu0 }
 0x23c   : > { %v1193_v22 = vpack.c.bf16 %v798_v21, %v798_v21 }
 0x23e   : > { %879 = vst.msk [vmem:[%s1995_s28 + $0x30] sm:$0xf] %vm866_vm0, %v1193_v22 }
 0x23f   : > { %v799_v24 = vpop.trf.xlu0 }
 0x240   : > { %v1194_v49 = vpack.c.bf16 %v799_v24, %v799_v24 }
 0x242   : > { %880 = vst.msk [vmem:[%s1995_s28 + $0x34] sm:$0xf] %vm866_vm0, %v1194_v49 }
 0x243   : > { %v800_v25 = vpop.trf.xlu0 }
 0x244   : > { %v1195_v50 = vpack.c.bf16 %v800_v25, %v800_v25 }
 0x246   : > { %881 = vst.msk [vmem:[%s1995_s28 + $0x38] sm:$0xf] %vm866_vm0, %v1195_v50 }
 0x247   : > { %v801_v26 = vpop.trf.xlu0 }
 0x248   : > { %v1196_v27 = vpack.c.bf16 %v801_v26, %v801_v26 }
 0x24a   : > { %882 = vst.msk [vmem:[%s1995_s28 + $0x3c] sm:$0xf] %vm866_vm0, %v1196_v27 }
 0x24b   : > { %1509 = shalt.err (!%p1506_p13)
}
 0x24c   : > { %s1510_s25 = scalar_lea.hbm %s2032_s5, 1024  ;;  %s1514_s28 = scalar_lea.hbm %s2091_s3, 2048 }
 0x24d   : > { %p1511_p6 = scmp.ne.s32.totalorder %s2032_s5, %s1510_s25  ;;  %p1515_p8 = scmp.lt.u32.totalorder %s2032_s5, %s2091_s3 }
 0x24e   : > { %p1516_p1 = scmp.lt.u32.totalorder %s1514_s28, %s1510_s25  ;;  %p1518_p3 = scmp.lt.u32.totalorder %s1510_s25, %s2032_s5 }
 0x24f   : > { %p1512_p7 = pnand %p1511_p6, %p2107_p12 }
 0x250   : > { %p1517_p10 = por %p1516_p1, %p1515_p8 }
 0x251   : > { %p1513_p2 = pneg %p1512_p7 }
 0x252   : > { %p1519_p5 = por %p1518_p3, %p1517_p10 }
 0x254   : > { %p1520_p9 = pnand %p1519_p5, %p1513_p2 }
 0x256   : > { %1523 = shalt.err (!%p1520_p9)
}
 0x257   : > { %1256 = dma.vmem_to_hbm [thread:$0]  (%p2107_p12), %s2034_s14, 1024, %s2032_s5, %s924_s8, %s1597_s13, %s1597_s13, %s1598_s29  }
 0x258 PF: > { %s976_s21 = sand.u32 1, %s1566_s15   ;;  %p2108_p11 = scmp.ne.s32.totalorder %s2100_s26, 0 }
 0x259   : > { %p2109_p0 = scmp.ge.s32.totalorder %s1586_s20, 2  ;;  %s977_s10 = scalar_lea.sflag [#allocation4], %s976_s21 }
 0x25b   : > { %p1272_p4 = pnand %p2109_p0, %p2108_p11 }
 0x25d   : > { %1557 = dma.done.wait (!%p1272_p4), %s977_s10, 1024  }
 0x25e   : > { %1559 = vsyncadd (!%p1272_p4), %s977_s10, 4294966272  ;;  %s986_s30 = scalar_lea.sflag [#allocation10], %s976_s21 }
 0x25f   : > { %1561 = dma.done.wait (!%p1272_p4), %s986_s30, 512  }
 0x260   : > { %1563 = vsyncadd (!%p1272_p4), %s986_s30, 4294966784  ;;  %s25_s20 = sadd.s32 1, %s1586_s20   ;;  %s2110_s15 = smov %s1570_s16 }
 0x261   : > { %p22_p13 = scmp.ge.s32.totalorder %s25_s20, 4   ;;  %s2111_s16 = smov %s1574_s17 }
 0x262   : > { %s2112_s17 = smov %s1767_s9  ;;  %s2113_s18 = smov %s1582_s19 }
 0x263   : > { %s2114_s19 = smov %s2116_s22  ;;  %24 = sbr.rel (!%p22_p13) target bundleno = 9 (0x9), region = 102 }
 0x26a   :  { %991 = vsyncpa [#allocation3], 1 }
 0x26b   :  { %993 = vsyncpa [#allocation3 + $0x1], 1 }
 0x26c   :  { %994 = vsyncpa [#allocation6], 1 }
 0x26d   :  { %995 = vsyncpa [#allocation4], 1 }
 0x26e   :  { %997 = vsyncpa [#allocation4 + $0x1], 1 }
 0x26f   :  { %998 = vsyncpa [#allocation10], 1 }
 0x270   :  { %1000 = vsyncpa [#allocation10 + $0x1], 1 }

// kernel: nonlocal_block_2d.3
= control target key start
LH: loop header
LB: loop body
LE: loop exit
PB: predicated region body
PF: predicated region fallthrough
CT: control target
= control target key end

     0   :  { %s3455_s0 = inlined_call_operand.hbm [shape: bf16[2,4,64,128], index: 0, kind: input, shape index: {}]   ;;  %s3456_s1 = inlined_call_operand.hbm [shape: bf16[2,128,64], index: 1, kind: input, shape index: {}]   ;;  %s3457_s2 = inlined_call_operand.hbm [shape: bf16[2,64,128], index: 2, kind: input, shape index: {}]   ;;  %s3458_s3 = inlined_call_operand.hbm [shape: bf16[128,128], index: 3, kind: input, shape index: {}]   ;;  %s3459_s4 = inlined_call_operand.hbm [shape: f32[1,128], index: 4, kind: input, shape index: {}]   ;;  %s3460_s5 = inlined_call_operand.hbm [shape: bf16[128,128], index: 5, kind: input, shape index: {}]   ;;  %s3461_s6 = inlined_call_operand.hbm [shape: f32[1,128], index: 6, kind: input, shape index: {}]   ;;  %s3462_s7 = inlined_call_operand.hbm [shape: f32[1,128], index: 7, kind: input, shape index: {}]   ;;  %s3463_s8 = inlined_call_operand.hbm [shape: f32[1,128], index: 8, kind: input, shape index: {}]   ;;  %s3464_s9 = inlined_call_operand.hbm [shape: f32[2,4,64,128], index: 9, kind: output, shape index: {}]  }
   0x1   :  { %3489 = sst [smem:[#allocation44_spill]] %s3457_s2 }
   0x2   :  { %3490 = sst [smem:[#allocation45_spill]] %s3458_s3 }
   0x3   :  { %3491 = sst [smem:[#allocation46_spill]] %s3464_s9 }
   0x4   :  { %14 = vsyncpa [#allocation3], 0 }
   0x5   :  { %16 = vsyncpa [#allocation3 + $0x1], 0 }
   0x6   :  { %17 = vsyncpa [#allocation6], 0 }
   0x7   :  { %19 = vsyncpa [#allocation6 + $0x1], 0 }
   0x8   :  { %20 = vsyncpa [#allocation9], 0 }
   0x9   :  { %21 = vsyncpa [#allocation12], 0 }
   0xa   :  { %22 = vsyncpa [#allocation15], 0 }
   0xb   :  { %23 = vsyncpa [#allocation4], 0 }
   0xc   :  { %25 = vsyncpa [#allocation4 + $0x1], 0  ;;  %s2767_s30 = smov 0   ;;  %s2769_s10 = smov 0  }
   0xd   :  { %s2771_s11 = smov 0   ;;  %s2773_s12 = smov 0  }
   0xe   :  { %s2775_s13 = smov 0   ;;  %s2777_s14 = smov 0  }
   0xf   :  { %s2779_s15 = smov 0   ;;  %s2781_s16 = smov 0  }
  0x10   :  { %s2783_s17 = smov 0   ;;  %s2785_s18 = smov 0  }
  0x11   :  { %s2787_s19 = smov 0  }
  0x12 LB: > { %3492 = sst [smem:[#allocation29_spill]] %s2655_s10  ;;  %s2823_s20 = sadd.s32 4294967295, %s2691_s19   ;;  %s2691_s19 = sphi %s2787_s19, %s31_s19   ;;  %s2687_s18 = sphi %s2785_s18, %s3558_s18   ;;  %s2683_s17 = sphi %s2783_s17, %s3557_s17   ;;  %s2679_s16 = sphi %s2781_s16, %s3556_s16   ;;  %s2675_s15 = sphi %s2779_s15, %s3555_s15   ;;  %s2671_s14 = sphi %s2777_s14, %s3554_s14   ;;  %s2667_s13 = sphi %s2775_s13, %s3553_s13   ;;  %s2663_s12 = sphi %s2773_s12, %s3547_s12   ;;  %s2659_s11 = sphi %s2771_s11, %s3552_s11   ;;  %s2655_s10 = sphi %s2769_s10, %s3551_s10   ;;  %s2651_s30 = sphi %s2767_s30, %s3545_s30  }
  0x13   : > { %3493 = sst [smem:[#allocation30_spill]] %s2663_s12  ;;  %s1806_s21 = sadd.s32 4294967294, %s2691_s19  }
  0x14   : > { %3494 = sst [smem:[#allocation31_spill]] %s2667_s13  ;;  %s40_s22 = sadd.s32 1, %s2683_s17 }
  0x15   : > { %3495 = sst [smem:[#allocation32_spill]] %s2675_s15  ;;  %s43_s23 = sadd.s32 1, %s2687_s18 }
  0x16   : > { %3496 = sst [smem:[#allocation33_spill]] %s2679_s16  ;;  %p41_p0 = scmp.ge.s32.totalorder %s40_s22, 2 }
  0x17   : > { %3497 = sst [smem:[#allocation34_spill]] %s2823_s20  ;;  %s52_s24 = sadd.s32 1, %s2671_s14 }
  0x18   : > { %p59_p1 = scmp.ne.s32.totalorder %s2671_s14, %s2667_s13  ;;  %p60_p2 = scmp.eq.s32.totalorder %s2691_s19, 0 }
  0x19   : > { %s3560_s22 = smov (%p41_p0, %s40_s22), 0  ;;  %s3562_s23 = smov (!%p41_p0, %s43_s23), %s2687_s18 }
  0x1a   : > { %3498 = sst [smem:[#allocation35_spill]] %s3560_s22  ;;  %s48_s25 = ssub.s32 %s2683_s17, %s3560_s22 }
  0x1b   : > { %p2842_p3 = por %p60_p2, %p59_p1  ;;  %p45_p4 = scmp.ge.s32.totalorder %s3562_s23, 2 }
  0x1c   : > { %p3468_p5 = scmp.ne.s32.totalorder %s2667_s13, %s2663_s12  ;;  %p3479_p6 = scmp.eq.s32.totalorder %s2823_s20, 0 }
  0x1d   : > { %s3499_s26 = scalar_select %p2842_p3, 1, 0 }
  0x1e   : > { %s78_s27 = sadd.s32 1, %s2659_s11  ;;  %s3564_s23 = smov (%p45_p4, %s3562_s23), 0 }
  0x1f   : > { %3500 = sst [smem:[#allocation36_spill]] %s3564_s23  ;;  %p2857_p7 = por %p3479_p6, %p3468_p5 }
  0x20   : > { %p85_p8 = scmp.ne.s32.totalorder %s2659_s11, %s2655_s10  ;;  %s47_s29 = ssub.s32 %s2687_s18, %s3564_s23 }
  0x21   : > { %s3501_s28 = scalar_select %p2857_p7, 1, 0 }
  0x22   : > { %p91_p9 = scmp.ne.s32.totalorder %s2655_s10, %s2651_s30  ;;  %s49_s22 = sor.u32 %s48_s25, %s47_s29 }
  0x23   : > { %3502 = sst [smem:[#allocation37_spill]] %s3501_s28  ;;  %p76_p10 = scmp.eq.s32.totalorder %s47_s29, 0 }
  0x24   : > { %p50_p11 = scmp.eq.s32.totalorder %s49_s22, 0  ;;  %p2869_p12 = por %p85_p8, %p60_p2 }
  0x25   : > { %s2874_s16 = scalar_select %p76_p10, %s2659_s11, %s78_s27  }
  0x26   : > { %s3503_s9 = scalar_select %p2869_p12, 1, 0 }
  0x27   : > { %3504 = sst [smem:[#allocation38_spill]] %s2874_s16  ;;  %p2881_p13 = por %p91_p9, %p3479_p6 }
  0x28   : > { %s2877_s15 = scalar_select %p50_p11, %s2671_s14, %s52_s24  }
  0x29   : > { %s3506_s28 = scalar_select %p2881_p13, 1, 0 }
  0x2a   : > { %3505 = sst [smem:[#allocation39_spill]] %s2877_s15  ;;  %p269_p0 = scmp.eq.s32.totalorder %s2823_s20, 3 }
  0x2b   : > { %3507 = sst [smem:[#allocation40_spill]] %s3506_s28  ;;  %p275_p4 = scmp.eq.s32.totalorder %s1806_s21, 3 }
  0x2c   : > { %p1807_p5 = scmp.ge.s32.totalorder %s2691_s19, 1  ;;  %p2890_p7 = por %p269_p0, %p59_p1 }
  0x2d   : > { %p282_p2 = scmp.lt.s32.totalorder %s2691_s19, 5  ;;  %p3510_p8 = scmp.ne.s32.totalorder %s2667_s13, %s2663_s12 }
  0x2e   : > { %s3508_s30 = scalar_select %p2890_p7, 1, 0 }
  0x2f   : > { %p2898_p12 = por %p275_p4, %p3510_p8  ;;  %p2902_p10 = pnand %p1807_p5, %p282_p2 }
  0x30   : > { %3509 = sst [smem:[#allocation41_spill]] %s3508_s30  ;;  %s2693_s25 = smov [#allocation8]  }
  0x31   : > { %s3511_s22 = scalar_select %p2898_p12, 1, 0 }
  0x32   : > { %s3513_s24 = scalar_select %p2902_p10, 1, 0 }
  0x33   : > { %3512 = sst [smem:[#allocation42_spill]] %s3511_s22  ;;  %s294_s27 = sshll.u32 %s2693_s25, 4  ;;  %s2908_s27 = int_to_ptr.vmem [resolvable:$true] %s294_s27 }
  0x34   : > { %3514 = sst [smem:[#allocation43_spill]] %s3513_s24  ;;  %p2119_p9 = pneg %p2902_p10 }
  0x35   : > { %s2694_s29 = smov [#allocation11]   ;;  %s2695_s15 = smov [#allocation14]  }
  0x36   : > { %p2912_p1 = pnand %p2119_p9, %p3479_p6  ;;  %s318_s23 = sshll.u32 %s2694_s29, 4  ;;  %s2916_s23 = int_to_ptr.vmem [resolvable:$true] %s318_s23 }
  0x37   : > { %s2918_s16 = sshll.u32 %s2695_s15, 4  ;;  %s3516_s3 = sld [smem:[#allocation45_spill]]  ;;  %s344_s16 = int_to_ptr.vmem [resolvable:$true] %s2918_s16 }
  0x38   : > { %p2928_p11 = pneg %p2912_p1 }
  0x3d   : > { %s2357_s25 = scalar_lea.hbm %s3516_s3, 1024 }
  0x3e   : > { %p2358_p5 = scmp.ne.s32.totalorder %s3516_s3, %s2357_s25  ;;  %p2364_p2 = scmp.lt.u32.totalorder %s2357_s25, %s3516_s3 }
  0x40   : > { %p2360_p0 = pnand %p2928_p11, %p2358_p5 }
  0x42   : > { %p2361_p4 = pneg %p2360_p0 }
  0x44   : > { %p2366_p8 = pnand %p2364_p2, %p2361_p4 }
  0x46   : > { %2369 = shalt.err (!%p2366_p8)
}
  0x47   : > { %s2370_s12 = scalar_lea.vmem %s2908_s27, 1024  ;;  %p2378_p7 = scmp.lt.s32.totalorder %s2908_s27, %s2908_s27 }
  0x48   : > { %p2371_p9 = scmp.ne.s32.totalorder %s2908_s27, %s2370_s12  ;;  %p2379_p13 = scmp.lt.s32.totalorder %s2370_s12, %s2370_s12 }
  0x4a   : > { %p2373_p6 = pnand %p2371_p9, %p2928_p11  ;;  %p2380_p5 = por %p2379_p13, %p2378_p7 }
  0x4c   : > { %p2374_p12 = pneg %p2373_p6 }
  0x4e   : > { %p2381_p0 = pnand %p2380_p5, %p2374_p12 }
  0x50   : > { %2384 = shalt.err (!%p2381_p0)
}
  0x51   : > { %s2696_s28 = smov 64   ;;  %s2697_s30 = smov 4  }
  0x52   : > { %2122 = dma.hbm_to_vmem [thread:$0]  (!%p2912_p1), %s3516_s3, 1024, %s2908_s27, [#allocation9], %s2696_s28, %s2696_s28, %s2697_s30  }
  0x53   : > { %s2385_s20 = scalar_lea.hbm %s3460_s5, 1024 }
  0x54   : > { %p2386_p6 = scmp.ne.s32.totalorder %s3460_s5, %s2385_s20  ;;  %p2392_p13 = scmp.lt.u32.totalorder %s2385_s20, %s3460_s5 }
  0x56   : > { %p2388_p7 = pnand %p2386_p6, %p2928_p11 }
  0x58   : > { %p2389_p12 = pneg %p2388_p7 }
  0x5a   : > { %p2394_p4 = pnand %p2392_p13, %p2389_p12 }
  0x5c   : > { %2397 = shalt.err (!%p2394_p4)
}
  0x5d   : > { %s2398_s27 = scalar_lea.vmem %s2916_s23, 1024  ;;  %p2406_p5 = scmp.lt.s32.totalorder %s2916_s23, %s2916_s23 }
  0x5e   : > { %p2399_p2 = scmp.ne.s32.totalorder %s2916_s23, %s2398_s27  ;;  %p2407_p0 = scmp.lt.s32.totalorder %s2398_s27, %s2398_s27 }
  0x60   : > { %p2401_p8 = pnand %p2399_p2, %p2928_p11  ;;  %p2408_p6 = por %p2407_p0, %p2406_p5 }
  0x62   : > { %p2402_p9 = pneg %p2401_p8 }
  0x64   : > { %p2409_p7 = pnand %p2408_p6, %p2402_p9 }
  0x66   : > { %2412 = shalt.err (!%p2409_p7)
}
  0x67   : > { %2128 = dma.hbm_to_vmem [thread:$0]  (!%p2912_p1), %s3460_s5, 1024, %s2916_s23, [#allocation12], %s2696_s28, %s2696_s28, %s2697_s30  }
  0x68   : > { %s2413_s22 = scalar_lea.hbm %s3462_s7, 16 }
  0x69   : > { %p2414_p12 = scmp.ne.s32.totalorder %s3462_s7, %s2413_s22  ;;  %p2420_p2 = scmp.lt.u32.totalorder %s2413_s22, %s3462_s7 }
  0x6b   : > { %p2416_p13 = pnand %p2414_p12, %p2928_p11 }
  0x6d   : > { %p2417_p4 = pneg %p2416_p13 }
  0x6f   : > { %p2422_p8 = pnand %p2420_p2, %p2417_p4 }
  0x71   : > { %2425 = shalt.err (!%p2422_p8)
}
  0x72   : > { %s2426_s27 = scalar_lea.vmem %s344_s16, 16  ;;  %s2433_s23 = scalar_lea.vmem %s344_s16, 32 }
  0x73   : > { %p2427_p9 = scmp.ne.s32.totalorder %s344_s16, %s2426_s27  ;;  %p2434_p6 = scmp.lt.s32.totalorder %s344_s16, %s344_s16 }
  0x74   : > { %p2435_p7 = scmp.lt.s32.totalorder %s2433_s23, %s2426_s27 }
  0x75   : > { %p2429_p5 = pnand %p2427_p9, %p2928_p11 }
  0x76   : > { %p2436_p10 = por %p2435_p7, %p2434_p6 }
  0x77   : > { %p2430_p0 = pneg %p2429_p5 }
  0x79   : > { %p2437_p3 = pnand %p2436_p10, %p2430_p0 }
  0x7b   : > { %2440 = shalt.err (!%p2437_p3)
}
  0x7c   : > { %2134 = dma.hbm_to_vmem [thread:$0]  (!%p2912_p1), %s3462_s7, 16, %s344_s16, [#allocation15]  }
  0x7d   : > { %s2698_s2 = smov [#allocation10]   ;;  %s2699_s20 = smov [#allocation13]  }
  0x7e   : > { %s308_s13 = sshll.u32 %s2698_s2, 4  ;;  %s332_s24 = sshll.u32 %s2699_s20, 4  ;;  %s309_s13 = int_to_ptr.vmem [resolvable:$true] %s308_s13  ;;  %s333_s24 = int_to_ptr.vmem [resolvable:$true] %s332_s24 }
  0x7f   : > { %s2441_s29 = scalar_lea.hbm %s3459_s4, 16 }
  0x80   : > { %p2442_p3 = scmp.ne.s32.totalorder %s3459_s4, %s2441_s29  ;;  %p2448_p13 = scmp.lt.u32.totalorder %s2441_s29, %s3459_s4 }
  0x82   : > { %p2444_p10 = pnand %p2442_p3, %p2928_p11 }
  0x84   : > { %p2445_p12 = pneg %p2444_p10 }
  0x86   : > { %p2450_p4 = pnand %p2448_p13, %p2445_p12 }
  0x88   : > { %2453 = shalt.err (!%p2450_p4)
}
  0x89   : > { %s2454_s16 = scalar_lea.vmem %s309_s13, 16  ;;  %s2461_s28 = scalar_lea.vmem %s309_s13, 32 }
  0x8a   : > { %p2455_p2 = scmp.ne.s32.totalorder %s309_s13, %s2454_s16  ;;  %p2462_p5 = scmp.lt.s32.totalorder %s309_s13, %s309_s13 }
  0x8b   : > { %p2463_p0 = scmp.lt.s32.totalorder %s2461_s28, %s2454_s16 }
  0x8c   : > { %p2457_p8 = pnand %p2455_p2, %p2928_p11 }
  0x8d   : > { %p2464_p6 = por %p2463_p0, %p2462_p5 }
  0x8e   : > { %p2458_p9 = pneg %p2457_p8 }
  0x90   : > { %p2465_p7 = pnand %p2464_p6, %p2458_p9 }
  0x92   : > { %2468 = shalt.err (!%p2465_p7)
}
  0x93   : > { %2125 = dma.hbm_to_vmem [thread:$0]  (!%p2912_p1), %s3459_s4, 16, %s309_s13, [#allocation9]  }
  0x94   : > { %s2469_s25 = scalar_lea.hbm %s3461_s6, 16 }
  0x95   : > { %p2470_p3 = scmp.ne.s32.totalorder %s3461_s6, %s2469_s25  ;;  %p2476_p13 = scmp.lt.u32.totalorder %s2469_s25, %s3461_s6 }
  0x97   : > { %p2472_p10 = pnand %p2470_p3, %p2928_p11 }
  0x99   : > { %p2473_p12 = pneg %p2472_p10 }
  0x9b   : > { %p2478_p4 = pnand %p2476_p13, %p2473_p12 }
  0x9d   : > { %2481 = shalt.err (!%p2478_p4)
}
  0x9e   : > { %s2482_s23 = scalar_lea.vmem %s333_s24, 16  ;;  %s2489_s13 = scalar_lea.vmem %s333_s24, 32 }
  0x9f   : > { %p2483_p2 = scmp.ne.s32.totalorder %s333_s24, %s2482_s23  ;;  %p2490_p5 = scmp.lt.s32.totalorder %s333_s24, %s333_s24 }
  0xa0   : > { %p2491_p0 = scmp.lt.s32.totalorder %s2489_s13, %s2482_s23 }
  0xa1   : > { %p2485_p8 = pnand %p2483_p2, %p2928_p11 }
  0xa2   : > { %p2492_p6 = por %p2491_p0, %p2490_p5 }
  0xa3   : > { %p2486_p9 = pneg %p2485_p8 }
  0xa5   : > { %p2493_p7 = pnand %p2492_p6, %p2486_p9 }
  0xa7   : > { %2496 = shalt.err (!%p2493_p7)
}
  0xa8   : > { %2131 = dma.hbm_to_vmem [thread:$0]  (!%p2912_p1), %s3461_s6, 16, %s333_s24, [#allocation12]  }
  0xa9   : > { %s2700_s30 = smov [#allocation16]   ;;  %s2497_s25 = scalar_lea.hbm %s3463_s8, 16 }
  0xaa   : > { %s354_s2 = sshll.u32 %s2700_s30, 4  ;;  %p2498_p3 = scmp.ne.s32.totalorder %s3463_s8, %s2497_s25  ;;  %s355_s2 = int_to_ptr.vmem [resolvable:$true] %s354_s2 }
  0xab   : > { %p2504_p13 = scmp.lt.u32.totalorder %s2497_s25, %s3463_s8 }
  0xac   : > { %p2500_p10 = pnand %p2498_p3, %p2928_p11 }
  0xae   : > { %p2501_p12 = pneg %p2500_p10 }
  0xb0   : > { %p2506_p4 = pnand %p2504_p13, %p2501_p12 }
  0xb2   : > { %2509 = shalt.err (!%p2506_p4)
}
  0xb3   : > { %s2510_s24 = scalar_lea.vmem %s355_s2, 16  ;;  %s2517_s23 = scalar_lea.vmem %s355_s2, 32 }
  0xb4   : > { %p2511_p2 = scmp.ne.s32.totalorder %s355_s2, %s2510_s24  ;;  %p2518_p5 = scmp.lt.s32.totalorder %s355_s2, %s355_s2 }
  0xb5   : > { %p2519_p0 = scmp.lt.s32.totalorder %s2517_s23, %s2510_s24 }
  0xb6   : > { %p2513_p8 = pnand %p2511_p2, %p2928_p11 }
  0xb7   : > { %p2520_p6 = por %p2519_p0, %p2518_p5 }
  0xb8   : > { %p2514_p9 = pneg %p2513_p8 }
  0xba   : > { %p2521_p7 = pnand %p2520_p6, %p2514_p9 }
  0xbc   : > { %2524 = shalt.err (!%p2521_p7)
}
  0xbd   : > { %2137 = dma.hbm_to_vmem [thread:$0]  (!%p2912_p1), %s3463_s8, 16, %s355_s2, [#allocation15]  }
  0xbe   : > { %p1814_p3 = scmp.ge.s32.totalorder %s2691_s19, 4 }
  0xc0   : > { %361 = sbr.rel (%p1814_p3) target bundleno = 270 (0x10e), region = 40 }
  0xc7   : > { %s365_s10 = sand.u32 1, %s2671_s14   ;;  %s1816_s28 = sshll.u32 %s2683_s17, 2 }
  0xc8   : > { %s1815_s30 = sshll.u32 %s365_s10, 6  ;;  %s1817_s20 = sshll.u32 %s2687_s18, 5 }
  0xc9   : > { %s375_s21 = sadd.s32 %s1817_s20, %s1816_s28  ;;  %s369_s22 = scalar_lea.vmem [#allocation2], %s1815_s30 }
  0xca   : > { %s390_s2 = sshll.u32 %s369_s22, 4  ;;  %s1818_s25 = sshll.u32 %s375_s21, 6  ;;  %s391_s2 = int_to_ptr.vmem [resolvable:$true] %s390_s2 }
  0xcb   : > { %p3518_p1 = scmp.ne.s32.totalorder %s3499_s26, 0  ;;  %s2701_s15 = smov 512  }
  0xcc   : > { %s2702_s27 = smov 256   ;;  %s2703_s24 = smov 4  }
  0xcd   : > { %s2086_s29 = scalar_select %p3518_p1, [#allocation0], [#allocation22] }
  0xce   : > { %2087 = sst [smem:[#allocation19]] (%p3518_p1), %s2701_s15  ;;  %s2704_s23 = smov 64  }
  0xcf   : > { %s382_s12 = sld [smem:[%s2086_s29]]   ;;  %s377_s28 = scalar_lea.hbm %s3455_s0, %s1818_s25 }
  0xd0   : > { %2088 = sst [smem:[#allocation19 + $0x1]] (%p3518_p1), %s2702_s27  ;;  %s366_s21 = scalar_lea.sflag [#allocation3], %s365_s10 }
  0xd1   : > { %2089 = sst [smem:[#allocation19 + $0x2]] (%p3518_p1), %s2703_s24  ;;  %s2705_s22 = smov [#allocation18]  }
  0xd2   : > { %2090 = sst [smem:[#allocation19 + $0x3]] (%p3518_p1), %s2704_s23  ;;  %s413_s29 = sand.u32 1, %s2691_s19  }
  0xd3   : > { %2091 = sst [smem:[#allocation19 + $0x4]] (%p3518_p1), %s2704_s23  ;;  %s415_s15 = sand.u32 1, %s2659_s11  }
  0xd4   : > { %2092 = sst [smem:[#allocation19 + $0x5]] (%p3518_p1), %s2703_s24  ;;  %s1821_s27 = sshll.u32 %s415_s15, 6 }
  0xd5   : > { %s1819_s30 = sshll.u32 %s382_s12, 26  ;;  %s1892_s3 = sshll.u32 %s2687_s18, 10 }
  0xd6   : > { %s1820_s20 = sadd.s32 134217728, %s1819_s30  ;;  %s3074_s23 = scalar_lea.hbm %s3456_s1, %s1892_s3 }
  0xd7   : > { %2093 = dma.general (%p3518_p1), %s377_s28, 1024, %s391_s2, %s366_s21, %s2705_s22, [#allocation19], %s1820_s20, 0  }
  0xd8   : > { %s417_s10 = scalar_lea.vmem [#allocation5], %s1821_s27  ;;  %s3078_s2 = sshll.u32 %s415_s15, 5 }
  0xd9   : > { %s424_s26 = sshll.u32 %s417_s10, 4  ;;  %s3080_s12 = scalar_lea.sflag [#allocation6], %s413_s29  ;;  %s3076_s26 = int_to_ptr.vmem [resolvable:$true] %s424_s26 }
  0xda   : > { %s2525_s24 = scalar_lea.hbm %s3074_s23, 1024  ;;  %p3519_p10 = scmp.ne.s32.totalorder %s3503_s9, 0 }
  0xdb   : > { %p2526_p11 = scmp.ne.s32.totalorder %s3074_s23, %s2525_s24  ;;  %s2529_s28 = scalar_lea.hbm %s3456_s1, 2048 }
  0xdc   : > { %p2530_p4 = scmp.lt.u32.totalorder %s3074_s23, %s3456_s1  ;;  %p2531_p2 = scmp.lt.u32.totalorder %s2529_s28, %s2525_s24 }
  0xdd   : > { %p2527_p12 = pnand %p2526_p11, %p3519_p10  ;;  %p2533_p9 = scmp.lt.u32.totalorder %s2525_s24, %s3074_s23 }
  0xde   : > { %p2532_p8 = por %p2531_p2, %p2530_p4 }
  0xdf   : > { %p2528_p13 = pneg %p2527_p12 }
  0xe0   : > { %p2534_p5 = por %p2533_p9, %p2532_p8 }
  0xe2   : > { %p2535_p0 = pnand %p2534_p5, %p2528_p13 }
  0xe4   : > { %2538 = shalt.err (!%p2535_p0)
}
  0xe5   : > { %s2539_s21 = scalar_lea.vmem %s3076_s26, 1024  ;;  %s2706_s22 = smov [#allocation5]  }
  0xe6   : > { %p2540_p6 = scmp.ne.s32.totalorder %s3076_s26, %s2539_s21  ;;  %s2543_s29 = sshll.u32 %s2706_s22, 4  ;;  %s2544_s29 = int_to_ptr.vmem [resolvable:$false] %s2543_s29 }
  0xe7   : > { %s2545_s15 = scalar_lea.vmem %s2544_s29, 2048  ;;  %p2546_p1 = scmp.lt.s32.totalorder %s3076_s26, %s2544_s29 }
  0xe8   : > { %p2541_p7 = pnand %p2540_p6, %p3519_p10  ;;  %p2547_p11 = scmp.lt.s32.totalorder %s2545_s15, %s2539_s21 }
  0xea   : > { %p2542_p3 = pneg %p2541_p7  ;;  %p2548_p12 = por %p2547_p11, %p2546_p1 }
  0xec   : > { %p2549_p4 = pnand %p2548_p12, %p2542_p3 }
  0xee   : > { %2552 = shalt.err (!%p2549_p4)
}
  0xef   : > { %s2707_s27 = smov 64   ;;  %s2708_s13 = smov 4  }
  0xf0   : > { %2094 = dma.hbm_to_vmem [thread:$0]  (%p3519_p10), %s3074_s23, 1024, %s3076_s26, %s3080_s12, %s2707_s27, %s2707_s27, %s2708_s13  }
  0xf1   : > { %s1893_s25 = sshll.u32 %s2687_s18, 9  ;;  %s3520_s16 = sld [smem:[#allocation44_spill]] }
  0xf2   : > { %s438_s30 = scalar_lea.vmem [#allocation7], %s3078_s2 }
  0xf3   : > { %s445_s20 = sshll.u32 %s438_s30, 4  ;;  %s3114_s20 = int_to_ptr.vmem [resolvable:$true] %s445_s20 }
  0xf7   : > { %s3521_s3 = smov %s3520_s16  ;;  %s3111_s28 = scalar_lea.hbm %s3520_s16, %s1893_s25 }
  0xf8   : > { %s2553_s21 = scalar_lea.hbm %s3111_s28, 512  ;;  %s2557_s22 = scalar_lea.hbm %s3521_s3, 1024 }
  0xf9   : > { %p2554_p13 = scmp.ne.s32.totalorder %s3111_s28, %s2553_s21  ;;  %p2558_p9 = scmp.lt.u32.totalorder %s3111_s28, %s3521_s3 }
  0xfa   : > { %p2559_p5 = scmp.lt.u32.totalorder %s2557_s22, %s2553_s21  ;;  %p2561_p6 = scmp.lt.u32.totalorder %s2553_s21, %s3111_s28 }
  0xfb   : > { %p2555_p2 = pnand %p2554_p13, %p3519_p10 }
  0xfc   : > { %p2560_p0 = por %p2559_p5, %p2558_p9 }
  0xfd   : > { %p2556_p8 = pneg %p2555_p2 }
  0xfe   : > { %p2562_p7 = por %p2561_p6, %p2560_p0 }
 0x100   : > { %p2563_p3 = pnand %p2562_p7, %p2556_p8 }
 0x102   : > { %2566 = shalt.err (!%p2563_p3)
}
 0x103   : > { %s2567_s2 = scalar_lea.vmem %s3114_s20, 512  ;;  %s2709_s25 = smov [#allocation7]  }
 0x104   : > { %p2568_p1 = scmp.ne.s32.totalorder %s3114_s20, %s2567_s2  ;;  %s2571_s10 = sshll.u32 %s2709_s25, 4  ;;  %s2572_s10 = int_to_ptr.vmem [resolvable:$false] %s2571_s10 }
 0x105   : > { %s2573_s24 = scalar_lea.vmem %s2572_s10, 1024  ;;  %p2574_p4 = scmp.lt.s32.totalorder %s3114_s20, %s2572_s10 }
 0x106   : > { %p2569_p11 = pnand %p2568_p1, %p3519_p10  ;;  %p2575_p13 = scmp.lt.s32.totalorder %s2573_s24, %s2567_s2 }
 0x108   : > { %p2570_p12 = pneg %p2569_p11  ;;  %p2576_p2 = por %p2575_p13, %p2574_p4 }
 0x10a   : > { %p2577_p9 = pnand %p2576_p2, %p2570_p12 }
 0x10c   : > { %2580 = shalt.err (!%p2577_p9)
}
 0x10d   : > { %2095 = dma.hbm_to_vmem [thread:$0]  (%p3519_p10), %s3111_s28, 512, %s3114_s20, %s3080_s12, %s2707_s27, %s2707_s27, %s2708_s13  }
 0x10e PF: > { %s3522_s16 = sld [smem:[#allocation43_spill]] }
 0x114   : > { %p3523_p8 = scmp.ne.s32.totalorder %s3522_s16, 0 }
 0x115   : > { %s3524_s30 = sld [smem:[#allocation31_spill]] (!%p3523_p8)  ;;  %s3525_s21 = sld [smem:[#allocation37_spill]] (!%p3523_p8) }
 0x116   : > { %457 = sbr.rel (%p3523_p8) target bundleno = 1424 (0x590), region = 56 }
 0x11b   : > { %s3144_s23 = sand.u32 (!%p3523_p8), 1, %s3524_s30   ;;  %p3526_p5 = scmp.ne.s32.totalorder (!%p3523_p8), %s3525_s21, 0 }
 0x11c   : > { %s1828_s26 = sshll.u32 (!%p3523_p8), %s3144_s23, 6  ;;  %s460_s22 = scalar_lea.sflag (!%p3523_p8), [#allocation3], %s3144_s23 }
 0x11d   : > { %s3148_s9 = scalar_lea.vmem [#allocation2], %s1828_s26 }
 0x11e   : > { %2626 = dma.done.wait (%p3526_p5), %s460_s22, 1024  }
 0x11f   : > { %2628 = vsyncadd (%p3526_p5), %s460_s22, 4294966272  ;;  %s3527_s12 = sld [smem:[#allocation34_spill]]  ;;  %s3528_s27 = sld [smem:[#allocation29_spill]] }
 0x120   : > { %s3529_s13 = sld [smem:[#allocation40_spill]] }
 0x125   : > { %s468_s28 = sand.u32 1, %s3527_s12   ;;  %s470_s20 = sand.u32 1, %s3528_s27  }
 0x126   : > { %s1829_s29 = sshll.u32 %s470_s20, 6  ;;  %s469_s15 = scalar_lea.sflag [#allocation6], %s468_s28 }
 0x127   : > { %s3156_s2 = scalar_lea.vmem [#allocation5], %s1829_s29  ;;  %p3530_p10 = scmp.ne.s32.totalorder %s3529_s13, 0 }
 0x129   : > { %2630 = dma.done.wait (%p3530_p10), %s469_s15, 1536  }
 0x12a   : > { %2632 = vsyncadd (%p3530_p10), %s469_s15, 4294965760  ;;  %s1830_s25 = sshll.u32 %s470_s20, 5  ;;  %p3531_p0 = scmp.eq.s32.totalorder %s3527_s12, 0 }
 0x12b   : > { %s3162_s10 = scalar_lea.vmem [#allocation7], %s1830_s25 }
 0x12c   : > { %2634 = dma.done.wait (%p3531_p0), [#allocation9], 1040   ;;  %p3532_p6 = pmov %p3531_p0 }
 0x12d   : > { %p3533_p7 = pmov %p3531_p0 }
 0x12e   : > { %2636 = vsyncadd (%p3532_p6), [#allocation9], 4294966256 }
 0x12f   : > { %2638 = dma.done.wait (%p3533_p7), [#allocation12], 1040   ;;  %p3534_p3 = pmov %p3531_p0 }
 0x130   : > { %p3535_p1 = pmov %p3531_p0 }
 0x131   : > { %2640 = vsyncadd (%p3534_p3), [#allocation12], 4294966256 }
 0x132   : > { %2642 = dma.done.wait (%p3535_p1), [#allocation15], 32   ;;  %p3536_p11 = pmov %p3531_p0 }
 0x133   : > { %v2265_v0 = vld [vmem:[#allocation8] sm:$0xff]   ;;  %v2266_v1 = vld [vmem:[#allocation8 + $0x8] sm:$0xff]   ;;  %v2267_v2 = vld [vmem:[#allocation8 + $0x10] sm:$0xff]   ;;  %vm954_vm0 = vcmask 523264   ;;  %s1837_s24 = sshll.u32 %s3144_s23, 7  ;;  %s1571_s30 = scalar_lea.sflag [#allocation4], %s3144_s23 }
 0x134   : > { %2644 = vsyncadd (%p3536_p11), [#allocation15], 4294967264  ;;  %1954 = vmatprep.subr.bf16.mxu0 %v2265_v0  ;;  %v2268_v3 = vld [vmem:[#allocation8 + $0x18] sm:$0xff]   ;;  %v3177_v4 = vld [vmem:[%s3148_s9] sm:$0xff]   ;;  %s3331_s16 = scalar_lea.vmem [#allocation17], %s1837_s24 }
 0x135   : > { %1955 = vmatpush3.bf16.msra.mxu0 %v2265_v0  ;;  %v2269_v5 = vld [vmem:[#allocation8 + $0x20] sm:$0xff]   ;;  %1970 = vmatprep.mubr.bf16.mxu0 %v3177_v4  ;;  %v2282_v7 = vld [vmem:[%s3156_s2 + $0x8] sm:$0xff]   ;;  %v2283_v8 = vld [vmem:[%s3156_s2 + $0x10] sm:$0xff]  }
 0x136   : > { %1956 = vmatprep.subr.bf16.mxu0 %v2266_v1  ;;  %v2281_v6 = vld [vmem:[%s3156_s2] sm:$0xff]   ;;  %v2270_v9 = vld [vmem:[#allocation8 + $0x28] sm:$0xff]   ;;  %v2284_v10 = vld [vmem:[%s3156_s2 + $0x18] sm:$0xff]  }
 0x137   : > { %1986 = vmatprep.subr.bf16.mxu1 %v2281_v6  ;;  %v2271_v11 = vld [vmem:[#allocation8 + $0x30] sm:$0xff]   ;;  %v2285_v12 = vld [vmem:[%s3156_s2 + $0x20] sm:$0xff]   ;;  %v2272_v13 = vld [vmem:[#allocation8 + $0x38] sm:$0xff]  }
 0x138   : > { %1987 = vmatpush3.bf16.msra.mxu1 %v2281_v6  ;;  %v3186_v14 = vld [vmem:[%s3148_s9 + $0x8] sm:$0xff]   ;;  %v3190_v16 = vld [vmem:[%s3148_s9 + $0x10] sm:$0xff]   ;;  %v3195_v17 = vld [vmem:[%s3148_s9 + $0x18] sm:$0xff]  }
 0x139   : > { %1957 = vmatpush3.bf16.msra.mxu0 %v2266_v1  ;;  %1988 = vmatprep.subr.bf16.mxu1 %v2282_v7  ;;  %v2286_v15 = vld [vmem:[%s3156_s2 + $0x28] sm:$0xff]   ;;  %v3198_v18 = vld [vmem:[%s3148_s9 + $0x20] sm:$0xff]   ;;  %v3206_v20 = vld [vmem:[%s3148_s9 + $0x30] sm:$0xff]  }
 0x13a   : > { %1958 = vmatprep.subr.bf16.mxu0 %v2267_v2  ;;  %v3203_v19 = vld [vmem:[%s3148_s9 + $0x28] sm:$0xff]   ;;  %v3211_v21 = vld [vmem:[%s3148_s9 + $0x38] sm:$0xff]   ;;  %v2287_v22 = vld [vmem:[%s3156_s2 + $0x30] sm:$0xff]  }
 0x13b   : > { %v2288_v23 = vld [vmem:[%s3156_s2 + $0x38] sm:$0xff]   ;;  %v1838_v25 = vld [vmem:[#allocation10] ss:$0 sm:$0xff] }
 0x13c   : > { %1989 = vmatpush3.bf16.msra.mxu1 %v2282_v7  ;;  %v2289_v1 = vld [vmem:[%s3162_s10] sm:$0xff]  }
 0x13d   : > { %1959 = vmatpush3.bf16.msra.mxu0 %v2267_v2  ;;  %1990 = vmatprep.subr.bf16.mxu1 %v2283_v8 }
 0x13e   : > { %1960 = vmatprep.subr.bf16.mxu0 %v2268_v3 }
 0x140   : > { %1991 = vmatpush3.bf16.msra.mxu1 %v2283_v8 }
 0x141   : > { %1961 = vmatpush3.bf16.msra.mxu0 %v2268_v3  ;;  %1992 = vmatprep.subr.bf16.mxu1 %v2284_v10 }
 0x142   : > { %1962 = vmatprep.subr.bf16.mxu0 %v2269_v5 }
 0x144   : > { %1993 = vmatpush3.bf16.msra.mxu1 %v2284_v10 }
 0x145   : > { %1963 = vmatpush3.bf16.msra.mxu0 %v2269_v5  ;;  %1994 = vmatprep.subr.bf16.mxu1 %v2285_v12 }
 0x146   : > { %1964 = vmatprep.subr.bf16.mxu0 %v2270_v9 }
 0x148   : > { %1995 = vmatpush3.bf16.msra.mxu1 %v2285_v12 }
 0x149   : > { %1965 = vmatpush3.bf16.msra.mxu0 %v2270_v9  ;;  %1996 = vmatprep.subr.bf16.mxu1 %v2286_v15 }
 0x14a   : > { %1966 = vmatprep.subr.bf16.mxu0 %v2271_v11 }
 0x14c   : > { %1997 = vmatpush3.bf16.msra.mxu1 %v2286_v15 }
 0x14d   : > { %1967 = vmatpush3.bf16.msra.mxu0 %v2271_v11  ;;  %1998 = vmatprep.subr.bf16.mxu1 %v2287_v22 }
 0x14e   : > { %1968 = vmatprep.subr.bf16.mxu0 %v2272_v13 }
 0x150   : > { %1999 = vmatpush3.bf16.msra.mxu1 %v2287_v22 }
 0x151   : > { %1969 = vmatpush3.bf16.msra.mxu0 %v2272_v13  ;;  %2000 = vmatprep.subr.bf16.mxu1 %v2288_v23 }
 0x152   : > { %2018 = vmatprep.subr.bf16.mxu0 %v2289_v1 }
 0x154   : > { %1971 = vmatmul.mubr.bf16.vlgmr.msra.gmra.mrb[0].mxu0 %v3186_v14  ;;  %2001 = vmatpush3.bf16.msra.mxu1 %v2288_v23 }
 0x155   : > { %1974 = vmatprep.mubr.bf16.mxu0 %v3190_v16  ;;  %2019 = vmatpush3.bf16.msra.mxu0 %v2289_v1 }
 0x15c   : > { %1975 = vmatmul.mubr.bf16.gmra.mrb[4].mxu0 %v3195_v17 }
 0x15d   : > { %1978 = vmatprep.mubr.bf16.mxu0 %v3198_v18 }
 0x164   : > { %1979 = vmatmul.mubr.bf16.gmra.mrb[8].mxu0 %v3203_v19 }
 0x165   : > { %1982 = vmatprep.mubr.bf16.mxu0 %v3206_v20 }
 0x16c   : > { %1983 = vmatmul.mubr.bf16.gmra.mrb[12].mxu0 %v3211_v21 }
 0x227   : > { %v1972_v24 = vpop.f32.mrb[0].mxu0 }
 0x228   : > { %v722_v26 = vpop.f32.mrb[1].mxu0  ;;  %v731_v28 = vadd.f32 %v1972_v24, %v1838_v25 }
 0x229   : > { %v1973_v27 = vpop.f32.mrb[2].mxu0  ;;  %v723_v31 = vadd.f32 %v1838_v25, %v722_v26 }
 0x22a   : > { %v734_v29 = vadd.f32 %v1973_v27, %v1838_v25  ;;  %v725_v30 = vpop.f32.mrb[3].mxu0  ;;  %v2290_v27 = vld [vmem:[%s3162_s10 + $0x8] sm:$0xff]  }
 0x22b   : > { %v726_v32 = vadd.f32 %v1838_v25, %v725_v30  ;;  %2020 = vmatprep.subr.bf16.mxu0 %v2290_v27 }
 0x22c   : > { %v786_v33 = vpack.c.bf16 %v734_v29, %v731_v28  ;;  %2021 = vmatpush3.bf16.msra.mxu0 %v2290_v27 }
 0x22d   : > { %v785_v34 = vpack.c.bf16 %v726_v32, %v723_v31 }
 0x22f   : > { %v1976_v35 = vpop.f32.mrb[4].mxu0  ;;  %2002 = vmatprep.mubr.bf16.mxu1 %v785_v34 }
 0x230   : > { %v738_v36 = vpop.f32.mrb[5].mxu0  ;;  %2003 = vmatmul.mubr.bf16.vlgmr.msra.gmra.mrb[0].mxu1 %v786_v33  ;;  %v747_v38 = vadd.f32 %v1976_v35, %v1838_v25 }
 0x231   : > { %v1977_v37 = vpop.f32.mrb[6].mxu0  ;;  %v739_v41 = vadd.f32 %v1838_v25, %v738_v36 }
 0x232   : > { %v750_v39 = vadd.f32 %v1977_v37, %v1838_v25  ;;  %v741_v40 = vpop.f32.mrb[7].mxu0 }
 0x233   : > { %v742_v42 = vadd.f32 %v1838_v25, %v741_v40  ;;  %v2291_v40 = vld [vmem:[%s3162_s10 + $0x10] sm:$0xff]  }
 0x234   : > { %v788_v43 = vpack.c.bf16 %v750_v39, %v747_v38  ;;  %2022 = vmatprep.subr.bf16.mxu0 %v2291_v40 }
 0x235   : > { %v787_v44 = vpack.c.bf16 %v742_v42, %v739_v41  ;;  %2023 = vmatpush3.bf16.msra.mxu0 %v2291_v40 }
 0x237   : > { %v1980_v45 = vpop.f32.mrb[8].mxu0  ;;  %2006 = vmatprep.mubr.bf16.mxu1 %v787_v44  ;;  %v2292_v44 = vld [vmem:[%s3162_s10 + $0x18] sm:$0xff]  }
 0x238   : > { %v754_v46 = vpop.f32.mrb[9].mxu0  ;;  %2007 = vmatmul.mubr.bf16.gmra.mrb[4].mxu1 %v788_v43  ;;  %v763_v48 = vadd.f32 %v1980_v45, %v1838_v25  ;;  %2024 = vmatprep.subr.bf16.mxu0 %v2292_v44 }
 0x239   : > { %v1981_v47 = vpop.f32.mrb[10].mxu0  ;;  %v755_v51 = vadd.f32 %v1838_v25, %v754_v46  ;;  %2025 = vmatpush3.bf16.msra.mxu0 %v2292_v44 }
 0x23a   : > { %v766_v49 = vadd.f32 %v1981_v47, %v1838_v25  ;;  %v757_v50 = vpop.f32.mrb[11].mxu0 }
 0x23b   : > { %v758_v52 = vadd.f32 %v1838_v25, %v757_v50 }
 0x23c   : > { %v790_v53 = vpack.c.bf16 %v766_v49, %v763_v48 }
 0x23d   : > { %v789_v54 = vpack.c.bf16 %v758_v52, %v755_v51 }
 0x23f   : > { %v1984_v55 = vpop.f32.mrb[12].mxu0  ;;  %2010 = vmatprep.mubr.bf16.mxu1 %v789_v54 }
 0x240   : > { %v770_v56 = vpop.f32.mrb[13].mxu0  ;;  %2011 = vmatmul.mubr.bf16.gmra.mrb[8].mxu1 %v790_v53  ;;  %v779_v58 = vadd.f32 %v1984_v55, %v1838_v25 }
 0x241   : > { %v1985_v57 = vpop.f32.mrb[14].mxu0  ;;  %v771_v61 = vadd.f32 %v1838_v25, %v770_v56 }
 0x242   : > { %v782_v59 = vadd.f32 %v1985_v57, %v1838_v25  ;;  %v773_v60 = vpop.f32.mrb[15].mxu0 }
 0x243   : > { %v774_v62 = vadd.f32 %v1838_v25, %v773_v60 }
 0x244   : > { %v792_v63 = vpack.c.bf16 %v782_v59, %v779_v58 }
 0x245   : > { %v791_v0 = vpack.c.bf16 %v774_v62, %v771_v61 }
 0x247   : > { %2014 = vmatprep.mubr.bf16.mxu1 %v791_v0 }
 0x248   : > { %2015 = vmatmul.mubr.bf16.gmra.mrb[12].mxu1 %v792_v63 }
 0x303   : > { %v3217_v2 = vpop.f32.mrb[0].mxu1 }
 0x304   : > { %v3219_v3 = vpop.f32.mrb[1].mxu1  ;;  %v961_v5 = vsel %vm954_vm0, %v3217_v2, -inf }
 0x305   : > { %962 = vmax.xlane.f32.xlu1 %v961_v5  ;;  %v2005_v6 = vpop.f32.mrb[2].mxu1  ;;  %v955_v7 = vsel %vm954_vm0, %v3219_v3, -inf }
 0x306   : > { %956 = vmax.xlane.f32.xlu0 %v955_v7  ;;  %v894_v8 = vpop.f32.mrb[3].mxu1  ;;  %v964_v9 = vsel %vm954_vm0, %v2005_v6, -inf }
 0x307   : > { %v958_v10 = vsel %vm954_vm0, %v894_v8, -inf }
 0x309   : > { %965 = vmax.xlane.f32.xlu1 %v964_v9 }
 0x30a   : > { %959 = vmax.xlane.f32.xlu0 %v958_v10 }
 0x30b   : > { %v3227_v11 = vpop.f32.mrb[4].mxu1 }
 0x30c   : > { %v3229_v12 = vpop.f32.mrb[5].mxu1  ;;  %v973_v24 = vsel %vm954_vm0, %v3227_v11, -inf }
 0x30d   : > { %v3231_v13 = vpop.f32.mrb[6].mxu1  ;;  %v967_v15 = vsel %vm954_vm0, %v3229_v12, -inf }
 0x30e   : > { %968 = vmax.xlane.f32.xlu0 %v967_v15  ;;  %v910_v22 = vpop.f32.mrb[7].mxu1  ;;  %v976_v26 = vsel %vm954_vm0, %v3231_v13, -inf }
 0x30f   : > { %v970_v23 = vsel %vm954_vm0, %v910_v22, -inf }
 0x310   : > { %971 = vmax.xlane.f32.xlu1 %v970_v23 }
 0x312   : > { %974 = vmax.xlane.f32.xlu0 %v973_v24 }
 0x313   : > { %v3238_v25 = vpop.f32.mrb[8].mxu1 }
 0x314   : > { %977 = vmax.xlane.f32.xlu1 %v976_v26  ;;  %v3243_v28 = vpop.f32.mrb[9].mxu1  ;;  %v985_v33 = vsel %vm954_vm0, %v3238_v25, -inf }
 0x315   : > { %v3245_v29 = vpop.f32.mrb[10].mxu1  ;;  %v979_v30 = vsel %vm954_vm0, %v3243_v28, -inf }
 0x316   : > { %980 = vmax.xlane.f32.xlu0 %v979_v30  ;;  %v926_v31 = vpop.f32.mrb[11].mxu1  ;;  %v988_v35 = vsel %vm954_vm0, %v3245_v29, -inf }
 0x317   : > { %v982_v32 = vsel %vm954_vm0, %v926_v31, -inf }
 0x318   : > { %983 = vmax.xlane.f32.xlu1 %v982_v32 }
 0x31a   : > { %986 = vmax.xlane.f32.xlu0 %v985_v33 }
 0x31b   : > { %v3252_v34 = vpop.f32.mrb[12].mxu1 }
 0x31c   : > { %989 = vmax.xlane.f32.xlu1 %v988_v35  ;;  %v3256_v36 = vpop.f32.mrb[13].mxu1  ;;  %v997_v42 = vsel %vm954_vm0, %v3252_v34, -inf }
 0x31d   : > { %v3258_v37 = vpop.f32.mrb[14].mxu1  ;;  %v991_v38 = vsel %vm954_vm0, %v3256_v36, -inf }
 0x31e   : > { %992 = vmax.xlane.f32.xlu0 %v991_v38  ;;  %v3262_v39 = vpop.f32.mrb[15].mxu1  ;;  %v1000_v43 = vsel %vm954_vm0, %v3258_v37, -inf }
 0x31f   : > { %v994_v41 = vsel %vm954_vm0, %v3262_v39, -inf }
 0x320   : > { %995 = vmax.xlane.f32.xlu1 %v994_v41 }
 0x322   : > { %998 = vmax.xlane.f32.xlu0 %v997_v42 }
 0x324   : > { %1001 = vmax.xlane.f32.xlu1 %v1000_v43 }
 0x392   : > { %v963_v45 = vpop.xlane.xlu1 %962 }
 0x393   : > { %v957_v46 = vpop.xlane.xlu0 %956  ;;  %v1005_v48 = vsub.f32 %v3217_v2, %v963_v45 }
 0x394   : > { %v1003_v51 = vsub.f32 %v3219_v3, %v957_v46 }
 0x396   : > { %v966_v47 = vpop.xlane.xlu1 %965 }
 0x397   : > { %v1006_v49 = vsub.f32 %v2005_v6, %v966_v47  ;;  %v960_v50 = vpop.xlane.xlu0 %959 }
 0x398   : > { %v1004_v52 = vsub.f32 %v894_v8, %v960_v50 }
 0x399   : > { %v1020_v53 = vpack.c.bf16 %v1006_v49, %v1005_v48 }
 0x39a   : > { %v1019_v54 = vpack.c.bf16 %v1004_v52, %v1003_v51 }
 0x39b   : > { %v1031_v55 = vmul.bf16 1069105081, %v1020_v53  ;;  %v969_v56 = vpop.xlane.xlu0 %968 }
 0x39c   : > { %v1028_v57 = vmul.bf16 1069105081, %v1019_v54  ;;  %v1007_v59 = vsub.f32 %v3229_v12, %v969_v56 }
 0x39d   : > { %2309 = vpow.bf16 %v1031_v55  ;;  %v972_v58 = vpop.xlane.xlu1 %971 }
 0x39e   : > { %2311 = vpow.bf16 %v1028_v57  ;;  %v1008_v60 = vsub.f32 %v910_v22, %v972_v58 }
 0x39f   : > { %v975_v61 = vpop.xlane.xlu0 %974 }
 0x3a0   : > { %v1021_v62 = vpack.c.bf16 %v1008_v60, %v1007_v59  ;;  %v1009_v1 = vsub.f32 %v3227_v11, %v975_v61 }
 0x3a1   : > { %v978_v63 = vpop.xlane.xlu1 %977 }
 0x3a2   : > { %v1034_v0 = vmul.bf16 1069105081, %v1021_v62  ;;  %v1010_v2 = vsub.f32 %v3231_v13, %v978_v63 }
 0x3a3   : > { %v981_v3 = vpop.xlane.xlu0 %980 }
 0x3a4   : > { %2313 = vpow.bf16 %v1034_v0  ;;  %v1022_v5 = vpack.c.bf16 %v1010_v2, %v1009_v1  ;;  %v1011_v8 = vsub.f32 %v3243_v28, %v981_v3 }
 0x3a5   : > { %v984_v6 = vpop.xlane.xlu1 %983 }
 0x3a6   : > { %v1037_v7 = vmul.bf16 1069105081, %v1022_v5  ;;  %v1012_v9 = vsub.f32 %v926_v31, %v984_v6 }
 0x3a7   : > { %v987_v10 = vpop.xlane.xlu0 %986 }
 0x3a8   : > { %v2310_v15 = vpop.eup %2309  ;;  %2315 = vpow.bf16 %v1037_v7  ;;  %v1023_v12 = vpack.c.bf16 %v1012_v9, %v1011_v8  ;;  %v1013_v23 = vsub.f32 %v3238_v25, %v987_v10 }
 0x3a9   : > { %v2312_v22 = vpop.eup %2311  ;;  %v990_v24 = vpop.xlane.xlu1 %989  ;;  %v1053_v32 = vunpack.c.l.bf16 %v2310_v15  ;;  %v1054_v35 = vunpack.c.h.bf16 %v2310_v15 }
 0x3aa   : > { %v1040_v26 = vmul.bf16 1069105081, %v1023_v12  ;;  %v1014_v11 = vsub.f32 %v3245_v29, %v990_v24  ;;  %2026 = vmatprep.mubr.msk.bf16.mxu0 %vm954_vm0, %v2312_v22  ;;  %v1051_v13 = vunpack.c.l.bf16 %v2312_v22  ;;  %v1052_v27 = vunpack.c.h.bf16 %v2312_v22  ;;  %v2294_v24 = vld [vmem:[#allocation11 + $0x8] sm:$0xff]  }
 0x3ab   : > { %2027 = vmatmul.mubr.msk.bf16.vlgmr.msra.gmra.mrb[16].mxu0 %vm954_vm0, %v2310_v15  ;;  %v993_v30 = vpop.xlane.xlu0 %992  ;;  %v1073_v44 = vsel %vm954_vm0, %v1053_v32, 0.0  ;;  %v1076_v46 = vsel %vm954_vm0, %v1054_v35, 0.0 }
 0x3ac   : > { %2317 = vpow.bf16 %v1040_v26  ;;  %v1024_v28 = vpack.c.bf16 %v1014_v11, %v1013_v23  ;;  %v1067_v31 = vsel %vm954_vm0, %v1051_v13, 0.0  ;;  %v1070_v33 = vsel %vm954_vm0, %v1052_v27, 0.0  ;;  %v2293_v23 = vld [vmem:[#allocation11] sm:$0xff]   ;;  %v2295_v26 = vld [vmem:[#allocation11 + $0x10] sm:$0xff]   ;;  %v2296_v11 = vld [vmem:[#allocation11 + $0x18] sm:$0xff]  }
 0x3ad   : > { %1068 = vadd.xlane.f32.xlu0 %v1067_v31  ;;  %v996_v25 = vpop.xlane.xlu1 %995  ;;  %v1015_v29 = vsub.f32 %v3256_v36, %v993_v30  ;;  %1071 = vadd.xlane.f32.xlu1 %v1070_v33  ;;  %v2297_v13 = vld [vmem:[#allocation11 + $0x20] sm:$0xff]   ;;  %v2298_v27 = vld [vmem:[#allocation11 + $0x28] sm:$0xff]   ;;  %v2299_v30 = vld [vmem:[#allocation11 + $0x30] sm:$0xff]  }
 0x3ae   : > { %v1043_v38 = vmul.bf16 1069105081, %v1024_v28  ;;  %v1016_v40 = vsub.f32 %v3262_v39, %v996_v25  ;;  %2042 = vmatprep.subr.bf16.mxu1 %v2293_v23  ;;  %v2300_v28 = vld [vmem:[#allocation11 + $0x38] sm:$0xff]  }
 0x3af   : > { %v2314_v41 = vpop.eup %2313  ;;  %v999_v42 = vpop.xlane.xlu0 %998  ;;  %2043 = vmatpush3.bf16.msra.mxu1 %v2293_v23 }
 0x3b0   : > { %2319 = vpow.bf16 %v1043_v38  ;;  %v1025_v43 = vpack.c.bf16 %v1016_v40, %v1015_v29  ;;  %2030 = vmatprep.mubr.msk.bf16.mxu0 %vm954_vm0, %v2314_v41  ;;  %v1055_v45 = vunpack.c.l.bf16 %v2314_v41  ;;  %v1056_v48 = vunpack.c.h.bf16 %v2314_v41  ;;  %2044 = vmatprep.subr.bf16.mxu1 %v2294_v24 }
 0x3b1   : > { %1074 = vadd.xlane.f32.xlu0 %v1073_v44  ;;  %v1002_v47 = vpop.xlane.xlu1 %1001  ;;  %v1017_v36 = vsub.f32 %v3252_v34, %v999_v42  ;;  %1077 = vadd.xlane.f32.xlu1 %v1076_v46 }
 0x3b2   : > { %v1046_v49 = vmul.bf16 1069105081, %v1025_v43  ;;  %v1018_v39 = vsub.f32 %v3258_v37, %v1002_v47  ;;  %v1079_v52 = vsel %vm954_vm0, %v1055_v45, 0.0  ;;  %v1082_v54 = vsel %vm954_vm0, %v1056_v48, 0.0 }
 0x3b3   : > { %v2316_v50 = vpop.eup %2315  ;;  %2045 = vmatpush3.bf16.msra.mxu1 %v2294_v24 }
 0x3b4   : > { %2321 = vpow.bf16 %v1046_v49  ;;  %v1026_v51 = vpack.c.bf16 %v1018_v39, %v1017_v36  ;;  %2031 = vmatmul.mubr.msk.bf16.gmra.mrb[20].mxu0 %vm954_vm0, %v2316_v50  ;;  %v1057_v53 = vunpack.c.l.bf16 %v2316_v50  ;;  %v1058_v55 = vunpack.c.h.bf16 %v2316_v50  ;;  %2046 = vmatprep.subr.bf16.mxu1 %v2295_v26 }
 0x3b5   : > { %1080 = vadd.xlane.f32.xlu0 %v1079_v52  ;;  %1083 = vadd.xlane.f32.xlu1 %v1082_v54 }
 0x3b6   : > { %v1049_v56 = vmul.bf16 1069105081, %v1026_v51  ;;  %v1085_v34 = vsel %vm954_vm0, %v1057_v53, 0.0  ;;  %v1088_v58 = vsel %vm954_vm0, %v1058_v55, 0.0 }
 0x3b7   : > { %v2318_v57 = vpop.eup %2317  ;;  %2047 = vmatpush3.bf16.msra.mxu1 %v2295_v26 }
 0x3b8   : > { %2323 = vpow.bf16 %v1049_v56  ;;  %2034 = vmatprep.mubr.msk.bf16.mxu0 %vm954_vm0, %v2318_v57  ;;  %v1059_v37 = vunpack.c.l.bf16 %v2318_v57  ;;  %v1060_v59 = vunpack.c.h.bf16 %v2318_v57  ;;  %2048 = vmatprep.subr.bf16.mxu1 %v2296_v11 }
 0x3b9   : > { %1086 = vadd.xlane.f32.xlu0 %v1085_v34  ;;  %1089 = vadd.xlane.f32.xlu1 %v1088_v58 }
 0x3ba   : > { %v1091_v61 = vsel %vm954_vm0, %v1059_v37, 0.0  ;;  %v1094_v63 = vsel %vm954_vm0, %v1060_v59, 0.0 }
 0x3bb   : > { %v2320_v60 = vpop.eup %2319  ;;  %2049 = vmatpush3.bf16.msra.mxu1 %v2296_v11 }
 0x3bc   : > { %2035 = vmatmul.mubr.msk.bf16.gmra.mrb[24].mxu0 %vm954_vm0, %v2320_v60  ;;  %v1061_v62 = vunpack.c.l.bf16 %v2320_v60  ;;  %v1062_v0 = vunpack.c.h.bf16 %v2320_v60  ;;  %2050 = vmatprep.subr.bf16.mxu1 %v2297_v13 }
 0x3bd   : > { %1092 = vadd.xlane.f32.xlu0 %v1091_v61  ;;  %1095 = vadd.xlane.f32.xlu1 %v1094_v63 }
 0x3be   : > { %v1097_v2 = vsel %vm954_vm0, %v1061_v62, 0.0  ;;  %v1100_v5 = vsel %vm954_vm0, %v1062_v0, 0.0 }
 0x3bf   : > { %v2322_v1 = vpop.eup %2321  ;;  %2051 = vmatpush3.bf16.msra.mxu1 %v2297_v13 }
 0x3c0   : > { %2038 = vmatprep.mubr.msk.bf16.mxu0 %vm954_vm0, %v2322_v1  ;;  %v1063_v3 = vunpack.c.l.bf16 %v2322_v1  ;;  %v1064_v6 = vunpack.c.h.bf16 %v2322_v1  ;;  %2052 = vmatprep.subr.bf16.mxu1 %v2298_v27 }
 0x3c1   : > { %1098 = vadd.xlane.f32.xlu0 %v1097_v2  ;;  %1101 = vadd.xlane.f32.xlu1 %v1100_v5 }
 0x3c2   : > { %v1103_v8 = vsel %vm954_vm0, %v1063_v3, 0.0  ;;  %v1106_v10 = vsel %vm954_vm0, %v1064_v6, 0.0 }
 0x3c3   : > { %v2324_v7 = vpop.eup %2323  ;;  %2053 = vmatpush3.bf16.msra.mxu1 %v2298_v27 }
 0x3c4   : > { %2039 = vmatmul.mubr.msk.bf16.gmra.mrb[28].mxu0 %vm954_vm0, %v2324_v7  ;;  %v1065_v9 = vunpack.c.l.bf16 %v2324_v7  ;;  %v1066_v15 = vunpack.c.h.bf16 %v2324_v7  ;;  %2054 = vmatprep.subr.bf16.mxu1 %v2299_v30 }
 0x3c5   : > { %1104 = vadd.xlane.f32.xlu0 %v1103_v8  ;;  %1107 = vadd.xlane.f32.xlu1 %v1106_v10 }
 0x3c6   : > { %v1109_v12 = vsel %vm954_vm0, %v1065_v9, 0.0  ;;  %v1112_v22 = vsel %vm954_vm0, %v1066_v15, 0.0 }
 0x3c7   : > { %2055 = vmatpush3.bf16.msra.mxu1 %v2299_v30 }
 0x3c8   : > { %2056 = vmatprep.subr.bf16.mxu1 %v2300_v28 }
 0x3c9   : > { %1110 = vadd.xlane.f32.xlu0 %v1109_v12  ;;  %1113 = vadd.xlane.f32.xlu1 %v1112_v22 }
 0x3cb   : > { %2057 = vmatpush3.bf16.msra.mxu1 %v2300_v28 }
 0x43a   : > { %v1069_v31 = vpop.xlane.xlu0 %1068  ;;  %v1072_v32 = vpop.xlane.xlu1 %1071 }
 0x43b   : > { %2325 = vrcp.f32 %v1069_v31 }
 0x43e   : > { %v1075_v33 = vpop.xlane.xlu0 %1074  ;;  %v1078_v25 = vpop.xlane.xlu1 %1077 }
 0x43f   : > { %2327 = vrcp.f32 %v1075_v33 }
 0x440   : > { %2329 = vrcp.f32 %v1078_v25 }
 0x441   : > { %2331 = vrcp.f32 %v1072_v32 }
 0x442   : > { %v1081_v35 = vpop.xlane.xlu0 %1080  ;;  %v1084_v38 = vpop.xlane.xlu1 %1083 }
 0x443   : > { %2333 = vrcp.f32 %v1081_v35 }
 0x445   : > { %v2326_v43 = vpop.eup %2325 }
 0x446   : > { %v1087_v29 = vpop.xlane.xlu0 %1086  ;;  %v1090_v40 = vpop.xlane.xlu1 %1089 }
 0x447   : > { %2335 = vrcp.f32 %v1087_v29 }
 0x448   : > { %2337 = vrcp.f32 %v1090_v40 }
 0x449   : > { %v2328_v45 = vpop.eup %2327  ;;  %2339 = vrcp.f32 %v1084_v38 }
 0x44a   : > { %v1093_v41 = vpop.xlane.xlu0 %1092  ;;  %v1096_v42 = vpop.xlane.xlu1 %1095 }
 0x44b   : > { %v2330_v48 = vpop.eup %2329  ;;  %2341 = vrcp.f32 %v1093_v41 }
 0x44c   : > { %v2332_v39 = vpop.eup %2331 }
 0x44d   : > { %v2334_v37 = vpop.eup %2333 }
 0x44e   : > { %v1099_v46 = vpop.xlane.xlu0 %1098  ;;  %v1102_v49 = vpop.xlane.xlu1 %1101 }
 0x44f   : > { %2343 = vrcp.f32 %v1099_v46 }
 0x450   : > { %2345 = vrcp.f32 %v1102_v49  ;;  %v3308_v49 = vld [vmem:[#allocation13] ss:$0 sm:$0xff] }
 0x451   : > { %v2336_v59 = vpop.eup %2335  ;;  %2347 = vrcp.f32 %v1096_v42 }
 0x452   : > { %v1105_v57 = vpop.xlane.xlu0 %1104  ;;  %v1108_v34 = vpop.xlane.xlu1 %1107 }
 0x453   : > { %v2338_v61 = vpop.eup %2337  ;;  %2349 = vrcp.f32 %v1105_v57 }
 0x454   : > { %v2340_v63 = vpop.eup %2339 }
 0x455   : > { %v2342_v10 = vpop.eup %2341 }
 0x456   : > { %v1111_v3 = vpop.xlane.xlu0 %1110  ;;  %v1114_v7 = vpop.xlane.xlu1 %1113 }
 0x457   : > { %2351 = vrcp.f32 %v1111_v3 }
 0x458   : > { %2353 = vrcp.f32 %v1114_v7 }
 0x459   : > { %v2344_v12 = vpop.eup %2343  ;;  %2355 = vrcp.f32 %v1108_v34 }
 0x45a   : > { %v2346_v23 = vpop.eup %2345 }
 0x45b   : > { %v2348_v26 = vpop.eup %2347 }
 0x45d   : > { %v2350_v33 = vpop.eup %2349 }
 0x461   : > { %v2352_v35 = vpop.eup %2351 }
 0x462   : > { %v2354_v29 = vpop.eup %2353 }
 0x463   : > { %v2356_v41 = vpop.eup %2355 }
 0x47e   : > { %v2028_v44 = vpop.f32.mrb[16].mxu0 }
 0x47f   : > { %v1205_v47 = vpop.f32.mrb[17].mxu0  ;;  %v1286_v50 = vmul.f32 %v2328_v45, %v2028_v44 }
 0x480   : > { %v2029_v36 = vpop.f32.mrb[18].mxu0  ;;  %v1284_v53 = vmul.f32 %v2326_v43, %v1205_v47 }
 0x481   : > { %v1287_v51 = vmul.f32 %v2330_v48, %v2029_v36  ;;  %v1208_v52 = vpop.f32.mrb[19].mxu0 }
 0x482   : > { %v1285_v54 = vmul.f32 %v2332_v39, %v1208_v52  ;;  %v3310_v39 = vld [vmem:[#allocation14] ss:$0 sm:$0xff]  ;;  %v3313_v52 = vld [vmem:[#allocation16] ss:$0 sm:$0xff] }
 0x483   : > { %v1301_v55 = vpack.c.bf16 %v1287_v51, %v1286_v50 }
 0x484   : > { %v1300_v56 = vpack.c.bf16 %v1285_v54, %v1284_v53 }
 0x486   : > { %2058 = vmatprep.mubr.bf16.mxu1 %v1300_v56 }
 0x487   : > { %v2032_v58 = vpop.f32.mrb[20].mxu0  ;;  %2059 = vmatmul.mubr.bf16.vlgmr.msra.gmra.mrb[16].mxu1 %v1301_v55  ;;  %v1524_v55 = vunpack.c.l.bf16 %v3186_v14 }
 0x488   : > { %v1221_v60 = vpop.f32.mrb[21].mxu0  ;;  %v1290_v0 = vmul.f32 %v2336_v59, %v2032_v58 }
 0x489   : > { %v2033_v62 = vpop.f32.mrb[22].mxu0  ;;  %v1288_v5 = vmul.f32 %v2334_v37, %v1221_v60  ;;  %v1522_v37 = vunpack.c.l.bf16 %v3177_v4  ;;  %v1525_v60 = vunpack.c.h.bf16 %v3186_v14 }
 0x48a   : > { %v1291_v1 = vmul.f32 %v2338_v61, %v2033_v62  ;;  %v1224_v2 = vpop.f32.mrb[23].mxu0 }
 0x48b   : > { %v1289_v6 = vmul.f32 %v2340_v63, %v1224_v2  ;;  %v1523_v63 = vunpack.c.h.bf16 %v3177_v4 }
 0x48c   : > { %v1303_v8 = vpack.c.bf16 %v1291_v1, %v1290_v0 }
 0x48d   : > { %v1302_v9 = vpack.c.bf16 %v1289_v6, %v1288_v5 }
 0x48f   : > { %v2036_v15 = vpop.f32.mrb[24].mxu0  ;;  %2062 = vmatprep.mubr.bf16.mxu1 %v1302_v9 }
 0x490   : > { %v1237_v22 = vpop.f32.mrb[25].mxu0  ;;  %2063 = vmatmul.mubr.bf16.gmra.mrb[20].mxu1 %v1303_v8  ;;  %v1294_v11 = vmul.f32 %v2344_v12, %v2036_v15  ;;  %v1528_v12 = vunpack.c.l.bf16 %v3195_v17 }
 0x491   : > { %v2037_v24 = vpop.f32.mrb[26].mxu0  ;;  %v1292_v30 = vmul.f32 %v2342_v10, %v1237_v22 }
 0x492   : > { %v1295_v13 = vmul.f32 %v2346_v23, %v2037_v24  ;;  %v1240_v27 = vpop.f32.mrb[27].mxu0 }
 0x493   : > { %v1293_v28 = vmul.f32 %v2348_v26, %v1240_v27  ;;  %v1526_v26 = vunpack.c.l.bf16 %v3190_v16  ;;  %v1529_v27 = vunpack.c.h.bf16 %v3195_v17 }
 0x494   : > { %v1305_v31 = vpack.c.bf16 %v1295_v13, %v1294_v11 }
 0x495   : > { %v1304_v32 = vpack.c.bf16 %v1293_v28, %v1292_v30 }
 0x497   : > { %v2040_v25 = vpop.f32.mrb[28].mxu0  ;;  %2066 = vmatprep.mubr.bf16.mxu1 %v1304_v32 }
 0x498   : > { %v1253_v38 = vpop.f32.mrb[29].mxu0  ;;  %2067 = vmatmul.mubr.bf16.gmra.mrb[24].mxu1 %v1305_v31  ;;  %v1298_v42 = vmul.f32 %v2352_v35, %v2040_v25  ;;  %v1527_v31 = vunpack.c.h.bf16 %v3190_v16 }
 0x499   : > { %v2041_v40 = vpop.f32.mrb[30].mxu0  ;;  %v1296_v45 = vmul.f32 %v2350_v33, %v1253_v38 }
 0x49a   : > { %v1299_v43 = vmul.f32 %v2354_v29, %v2041_v40  ;;  %v1256_v44 = vpop.f32.mrb[31].mxu0 }
 0x49b   : > { %v1297_v46 = vmul.f32 %v2356_v41, %v1256_v44 }
 0x49c   : > { %v1307_v47 = vpack.c.bf16 %v1299_v43, %v1298_v42 }
 0x49d   : > { %v1306_v48 = vpack.c.bf16 %v1297_v46, %v1296_v45  ;;  %v1532_v45 = vunpack.c.l.bf16 %v3203_v19 }
 0x49f   : > { %2070 = vmatprep.mubr.bf16.mxu1 %v1306_v48 }
 0x4a0   : > { %2071 = vmatmul.mubr.bf16.gmra.mrb[28].mxu1 %v1307_v47 }
 0x55a   : > { %v2060_v36 = vpop.f32.mrb[16].mxu1 }
 0x55b   : > { %v1422_v50 = vadd.f32 %v2060_v36, %v3308_v49  ;;  %v1413_v51 = vpop.f32.mrb[17].mxu1  ;;  %v1530_v36 = vunpack.c.l.bf16 %v3198_v18 }
 0x55c   : > { %v1414_v53 = vadd.f32 %v3308_v49, %v1413_v51  ;;  %v2061_v54 = vpop.f32.mrb[18].mxu1 }
 0x55d   : > { %v1485_v56 = vmul.f32 %v3310_v39, %v1422_v50  ;;  %v1425_v57 = vadd.f32 %v2061_v54, %v3308_v49  ;;  %v1416_v34 = vpop.f32.mrb[19].mxu1 }
 0x55e   : > { %v1483_v58 = vmul.f32 %v3310_v39, %v1414_v53  ;;  %v1417_v59 = vadd.f32 %v3308_v49, %v1416_v34  ;;  %v1533_v53 = vunpack.c.h.bf16 %v3203_v19 }
 0x55f   : > { %v1508_v61 = vadd.f32 %v3313_v52, %v1485_v56  ;;  %v1486_v62 = vmul.f32 %v3310_v39, %v1425_v57  ;;  %v1531_v56 = vunpack.c.h.bf16 %v3198_v18 }
 0x560   : > { %v1506_v0 = vadd.f32 %v3313_v52, %v1483_v58  ;;  %v1484_v1 = vmul.f32 %v3310_v39, %v1417_v59 }
 0x561   : > { %v1540_v2 = vadd.f32 %v1524_v55, %v1508_v61  ;;  %v1509_v3 = vadd.f32 %v3313_v52, %v1486_v62 }
 0x562   : > { %v1538_v5 = vadd.f32 %v1522_v37, %v1506_v0  ;;  %v1507_v6 = vadd.f32 %v3313_v52, %v1484_v1 }
 0x563   : > { %1556 = vst [vmem:[%s3331_s16 + $0x10] sm:$0xff] %v1540_v2  ;;  %v1541_v14 = vadd.f32 %v1525_v60, %v1509_v3  ;;  %v2064_v7 = vpop.f32.mrb[20].mxu1  ;;  %v1536_v2 = vunpack.c.l.bf16 %v3211_v21 }
 0x564   : > { %1554 = vst [vmem:[%s3331_s16] sm:$0xff] %v1538_v5  ;;  %v1539_v4 = vadd.f32 %v1523_v63, %v1507_v6  ;;  %v1438_v8 = vadd.f32 %v2064_v7, %v3308_v49  ;;  %v1429_v9 = vpop.f32.mrb[21].mxu1 }
 0x565   : > { %1557 = vst [vmem:[%s3331_s16 + $0x18] sm:$0xff] %v1541_v14  ;;  %v1430_v10 = vadd.f32 %v3308_v49, %v1429_v9  ;;  %v2065_v15 = vpop.f32.mrb[22].mxu1  ;;  %v1534_v14 = vunpack.c.l.bf16 %v3206_v20 }
 0x566   : > { %1555 = vst [vmem:[%s3331_s16 + $0x8] sm:$0xff] %v1539_v4  ;;  %v1489_v22 = vmul.f32 %v3310_v39, %v1438_v8  ;;  %v1441_v23 = vadd.f32 %v2065_v15, %v3308_v49  ;;  %v1432_v24 = vpop.f32.mrb[23].mxu1  ;;  %v1537_v8 = vunpack.c.h.bf16 %v3211_v21  ;;  %v1535_v15 = vunpack.c.h.bf16 %v3206_v20 }
 0x567   : > { %v1487_v11 = vmul.f32 %v3310_v39, %v1430_v10  ;;  %v1433_v13 = vadd.f32 %v3308_v49, %v1432_v24 }
 0x568   : > { %v1512_v30 = vadd.f32 %v3313_v52, %v1489_v22  ;;  %v1490_v28 = vmul.f32 %v3310_v39, %v1441_v23 }
 0x569   : > { %v1510_v32 = vadd.f32 %v3313_v52, %v1487_v11  ;;  %v1488_v33 = vmul.f32 %v3310_v39, %v1433_v13 }
 0x56a   : > { %v1544_v25 = vadd.f32 %v1528_v12, %v1512_v30  ;;  %v1513_v35 = vadd.f32 %v3313_v52, %v1490_v28 }
 0x56b   : > { %v1542_v38 = vadd.f32 %v1526_v26, %v1510_v32  ;;  %v1511_v29 = vadd.f32 %v3313_v52, %v1488_v33  ;;  %v2068_v40 = vpop.f32.mrb[24].mxu1 }
 0x56c   : > { %1560 = vst [vmem:[%s3331_s16 + $0x30] sm:$0xff] %v1544_v25  ;;  %v1545_v17 = vadd.f32 %v1529_v27, %v1513_v35  ;;  %v1454_v41 = vadd.f32 %v2068_v40, %v3308_v49  ;;  %v1445_v42 = vpop.f32.mrb[25].mxu1 }
 0x56d   : > { %1558 = vst [vmem:[%s3331_s16 + $0x20] sm:$0xff] %v1542_v38  ;;  %v1543_v16 = vadd.f32 %v1527_v31, %v1511_v29  ;;  %v1446_v43 = vadd.f32 %v3308_v49, %v1445_v42  ;;  %v2069_v44 = vpop.f32.mrb[26].mxu1 }
 0x56e   : > { %1561 = vst [vmem:[%s3331_s16 + $0x38] sm:$0xff] %v1545_v17  ;;  %v1493_v46 = vmul.f32 %v3310_v39, %v1454_v41  ;;  %v1457_v47 = vadd.f32 %v2069_v44, %v3308_v49  ;;  %v1448_v48 = vpop.f32.mrb[27].mxu1 }
 0x56f   : > { %1559 = vst [vmem:[%s3331_s16 + $0x28] sm:$0xff] %v1543_v16  ;;  %v1491_v50 = vmul.f32 %v3310_v39, %v1446_v43  ;;  %v1449_v51 = vadd.f32 %v3308_v49, %v1448_v48 }
 0x570   : > { %v1516_v54 = vadd.f32 %v3313_v52, %v1493_v46  ;;  %v1494_v55 = vmul.f32 %v3310_v39, %v1457_v47 }
 0x571   : > { %v1514_v57 = vadd.f32 %v3313_v52, %v1491_v50  ;;  %v1492_v34 = vmul.f32 %v3310_v39, %v1449_v51 }
 0x572   : > { %v1548_v37 = vadd.f32 %v1532_v45, %v1516_v54  ;;  %v1517_v58 = vadd.f32 %v3313_v52, %v1494_v55 }
 0x573   : > { %v1546_v59 = vadd.f32 %v1530_v36, %v1514_v57  ;;  %v1515_v60 = vadd.f32 %v3313_v52, %v1492_v34  ;;  %v2072_v61 = vpop.f32.mrb[28].mxu1 }
 0x574   : > { %1564 = vst [vmem:[%s3331_s16 + $0x50] sm:$0xff] %v1548_v37  ;;  %v1549_v19 = vadd.f32 %v1533_v53, %v1517_v58  ;;  %v1470_v62 = vadd.f32 %v2072_v61, %v3308_v49  ;;  %v1461_v63 = vpop.f32.mrb[29].mxu1 }
 0x575   : > { %1562 = vst [vmem:[%s3331_s16 + $0x40] sm:$0xff] %v1546_v59  ;;  %v1547_v18 = vadd.f32 %v1531_v56, %v1515_v60  ;;  %v1462_v0 = vadd.f32 %v3308_v49, %v1461_v63  ;;  %v2073_v1 = vpop.f32.mrb[30].mxu1 }
 0x576   : > { %1565 = vst [vmem:[%s3331_s16 + $0x58] sm:$0xff] %v1549_v19  ;;  %v1497_v3 = vmul.f32 %v3310_v39, %v1470_v62  ;;  %v1473_v5 = vadd.f32 %v2073_v1, %v3308_v49  ;;  %v1464_v6 = vpop.f32.mrb[31].mxu1 }
 0x577   : > { %1563 = vst [vmem:[%s3331_s16 + $0x48] sm:$0xff] %v1547_v18  ;;  %v1495_v7 = vmul.f32 %v3310_v39, %v1462_v0  ;;  %v1465_v4 = vadd.f32 %v3308_v49, %v1464_v6 }
 0x578   : > { %v1520_v9 = vadd.f32 %v3313_v52, %v1497_v3  ;;  %v1498_v10 = vmul.f32 %v3310_v39, %v1473_v5 }
 0x579   : > { %v1518_v12 = vadd.f32 %v3313_v52, %v1495_v7  ;;  %v1496_v22 = vmul.f32 %v3310_v39, %v1465_v4 }
 0x57a   : > { %v1552_v23 = vadd.f32 %v1536_v2, %v1520_v9  ;;  %v1521_v24 = vadd.f32 %v3313_v52, %v1498_v10 }
 0x57b   : > { %v1550_v26 = vadd.f32 %v1534_v14, %v1518_v12  ;;  %v1519_v49 = vadd.f32 %v3313_v52, %v1496_v22 }
 0x57c   : > { %1568 = vst [vmem:[%s3331_s16 + $0x70] sm:$0xff] %v1552_v23  ;;  %v1553_v11 = vadd.f32 %v1537_v8, %v1521_v24 }
 0x57d   : > { %1566 = vst [vmem:[%s3331_s16 + $0x60] sm:$0xff] %v1550_v26  ;;  %v1551_v21 = vadd.f32 %v1535_v15, %v1519_v49 }
 0x57e   : > { %1569 = vst [vmem:[%s3331_s16 + $0x78] sm:$0xff] %v1553_v11 }
 0x57f   : > { %1567 = vst [vmem:[%s3331_s16 + $0x68] sm:$0xff] %v1551_v21 }
 0x580   : > { %s3537_s21 = sld [smem:[#allocation32_spill]]  ;;  %s3538_s26 = sld [smem:[#allocation33_spill]] }
 0x581   : > { %s3539_s22 = sld [smem:[#allocation41_spill]]  ;;  %s1602_s13 = sshll.u32 %s3331_s16, 4  ;;  %s1603_s13 = int_to_ptr.vmem [resolvable:$true] %s1602_s13 }
 0x582   : > { %s3540_s15 = sld [smem:[#allocation46_spill]]  ;;  %s2710_s2 = smov 512  }
 0x583   : > { %s2711_s25 = smov 1024   ;;  %s2712_s10 = smov 4  }
 0x584   : > { %s2713_s24 = smov 128   ;;  %s2714_s16 = smov 8  }
 0x586   : > { %s1887_s9 = sshll.u32 %s3537_s21, 2  ;;  %s1888_s12 = sshll.u32 %s3538_s26, 5 }
 0x587   : > { %s1583_s27 = sadd.s32 %s1888_s12, %s1887_s9  ;;  %p3541_p12 = scmp.ne.s32.totalorder %s3539_s22, 0 }
 0x588   : > { %s1889_s28 = sshll.u32 %s1583_s27, 7  ;;  %s2715_s21 = smov [#allocation20]  }
 0x589   : > { %s1585_s23 = scalar_lea.hbm %s3540_s15, %s1889_s28  ;;  %2111 = sst [smem:[#allocation21]] (%p3541_p12), %s2710_s2 }
 0x58a   : > { %2112 = sst [smem:[#allocation21 + $0x1]] (%p3541_p12), %s2711_s25  ;;  %s2716_s26 = smov 0  }
 0x58b   : > { %2113 = sst [smem:[#allocation21 + $0x2]] (%p3541_p12), %s2712_s10 }
 0x58c   : > { %2114 = sst [smem:[#allocation21 + $0x3]] (%p3541_p12), %s2713_s24 }
 0x58d   : > { %2115 = sst [smem:[#allocation21 + $0x4]] (%p3541_p12), %s2713_s24 }
 0x58e   : > { %2116 = sst [smem:[#allocation21 + $0x5]] (%p3541_p12), %s2714_s16 }
 0x58f   : > { %2117 = dma.general (%p3541_p12), %s1603_s13, 2048, %s1585_s23, %s1571_s30, %s2715_s21, [#allocation21], %s2716_s26, 0  }
 0x590 PF: > { %s3542_s9 = sld [smem:[#allocation30_spill]]  ;;  %s3543_s12 = sld [smem:[#allocation42_spill]] }
 0x591   : > { %p2154_p4 = scmp.ge.s32.totalorder %s2691_s19, 2 }
 0x596   : > { %s1630_s27 = sand.u32 1, %s3542_s9   ;;  %p3544_p13 = scmp.ne.s32.totalorder %s3543_s12, 0 }
 0x597   : > { %s1631_s28 = scalar_lea.sflag [#allocation4], %s1630_s27 }
 0x598   : > { %p2139_p2 = pnand %p2154_p4, %p3544_p13 }
 0x59a   : > { %2646 = dma.done.wait (!%p2139_p2), %s1631_s28, 2048  }
 0x59b   : > { %2648 = vsyncadd (!%p2139_p2), %s1631_s28, 4294965248  ;;  %s31_s19 = sadd.s32 1, %s2691_s19   ;;  %s3545_s30 = sld [smem:[#allocation29_spill]] }
 0x59c   : > { %p28_p9 = scmp.ge.s32.totalorder %s31_s19, 6   ;;  %s3546_s20 = sld [smem:[#allocation38_spill]] }
 0x59d   : > { %s3547_s12 = sld [smem:[#allocation31_spill]]  ;;  %s3548_s22 = sld [smem:[#allocation39_spill]] }
 0x59e   : > { %s3549_s29 = sld [smem:[#allocation35_spill]]  ;;  %s3550_s23 = sld [smem:[#allocation36_spill]] }
 0x59f   : > { %s3551_s10 = smov %s2659_s11  ;;  %s3553_s13 = smov %s2671_s14 }
 0x5a0   : > { %s3555_s15 = smov %s2683_s17  ;;  %s3556_s16 = smov %s2687_s18 }
 0x5a1   :  { %30 = sbr.rel (!%p28_p9) target bundleno = 18 (0x12), region = 159 }
 0x5a2   : > { %s3552_s11 = smov %s3546_s20 }
 0x5a3   : > { %s3554_s14 = smov %s3548_s22 }
 0x5a4   : > { %s3557_s17 = smov %s3549_s29  ;;  %s3558_s18 = smov %s3550_s23 }
 0x5a8   :  { %1636 = vsyncpa [#allocation3], 1 }
 0x5a9   :  { %1638 = vsyncpa [#allocation3 + $0x1], 1 }
 0x5aa   :  { %1639 = vsyncpa [#allocation6], 1 }
 0x5ab   :  { %1641 = vsyncpa [#allocation6 + $0x1], 1 }
 0x5ac   :  { %1642 = vsyncpa [#allocation9], 1 }
 0x5ad   :  { %1643 = vsyncpa [#allocation12], 1 }
 0x5ae   :  { %1644 = vsyncpa [#allocation15], 1 }
 0x5af   :  { %1645 = vsyncpa [#allocation4], 1 }
 0x5b0   :  { %1647 = vsyncpa [#allocation4 + $0x1], 1 }

</bundles_post_ra>
